<compile_context>
chip_gen: v7x
topology: tpu7x:2x2x1
jax: 0.10.0
libtpu: 0.0.40
codegen_flags: <defaults>
</compile_context>

<pallas_src>
import functools

import jax
import jax.numpy as jnp
import numpy as np
from jax.experimental import pallas as pl
from jax.experimental.pallas import tpu as pltpu


def _round_up(x, m):
    return ((x + m - 1) // m) * m


def _entropy_kernel(traj_ref, cw_ref, noise_ref, out_ref, *, weight_method):
    # traj_ref : (E, W, Pt)  VMEM, problems on the lane axis
    # cw_ref   : (E, E)      SMEM, cov_weights (scalar reads)
    # noise_ref: (E, E, Pt)  VMEM, pre-sampled Normal(0, 1e-8) noise (SoA)
    # out_ref  : (1, Pt)     VMEM, 0.5 * log|det| per problem (lane-dense)
    E, W, Pt = traj_ref.shape

    X = traj_ref[...]                                   # (E, W, Pt)
    mu = jnp.mean(X, axis=1, keepdims=True)             # (E, 1, Pt)
    Xc = X - mu                                         # (E, W, Pt)

    factor = 1.0 / (W - 1)                              # bias=False
    rows = [Xc[e] for e in range(E)]                    # each (W, Pt)

    # Covariance: cov[e][f] = factor * sum_w Xc[e,w,:] * Xc[f,w,:]   -> (1, Pt)
    cov = [[None] * E for _ in range(E)]
    for e in range(E):
        for f in range(e, E):
            c = factor * jnp.sum(rows[e] * rows[f], axis=0, keepdims=True)
            cov[e][f] = c
            cov[f][e] = c

    # Hoist cov_weights scalars out of the unrolled loops (16 SMEM reads).
    cwv = [[cw_ref[i, j] for j in range(E)] for i in range(E)]

    if "quad" in weight_method:
        # B = cw @ cov ; C = B @ cw   (unrolled scalar * lane-vector FMAs)
        Bm = [[None] * E for _ in range(E)]
        for i in range(E):
            for f in range(E):
                acc = cwv[i][0] * cov[0][f]
                for e in range(1, E):
                    acc = acc + cwv[i][e] * cov[e][f]
                Bm[i][f] = acc
        C = [[None] * E for _ in range(E)]
        for i in range(E):
            for j in range(E):
                acc = Bm[i][0] * cwv[0][j]
                for f in range(1, E):
                    acc = acc + Bm[i][f] * cwv[f][j]
                C[i][j] = acc
    else:  # 'mul'
        C = [[cov[i][j] * cwv[i][j] for j in range(E)] for i in range(E)]

    # Add pre-sampled noise (padding lanes carry identity -> logdet 0 there).
    Nz = noise_ref[...]                                  # (E, E, Pt)
    for i in range(E):
        for j in range(E):
            C[i][j] = C[i][j] + Nz[i, j : j + 1, :]      # (1, Pt)

    # logdet_method == 'abs': log|det| via fully unrolled LU without pivoting,
    # lane-vectorized across problems.
    # TODO(synk): no partial pivoting (can differ from torch.slogdet for
    # indefinite 'mul' matrices); 'mean'/'min'/'max' NaN-patching branches of
    # logdet_method are not implemented in-kernel.
    ld = jnp.zeros((1, Pt), jnp.float32)
    M = C
    for k in range(E):
        piv = M[k][k]                                    # (1, Pt)
        ld = ld + jnp.log(jnp.abs(piv))
        rpiv = 1.0 / piv
        for i in range(k + 1, E):
            fki = M[i][k] * rpiv
            for j in range(k + 1, E):
                M[i][j] = M[i][j] - fki * M[k][j]

    out_ref[...] = 0.5 * ld


def get_entropy_forward(
    tensor,
    explr_dim,
    cov_weights,
    noise,
    *,
    full_dim,
    window_size,
    step_size,
    num_windows,
    weight_method="quad",
):
    """JAX/Pallas equivalent of GetEntropy.forward (logdet_method='abs')."""
    # --- glue: dim selection + SoA window layout (pure indexing/reshapes) ---
    if not full_dim:
        tensor = tensor[:, :, explr_dim]                 # (T, B, E)
    tensor = tensor.astype(jnp.float32)
    T, B, E = tensor.shape

    if window_size == 0:
        W, NW = T, 1
        traj_soa = jnp.transpose(tensor, (2, 0, 1))      # (E, T=W, B)
    else:
        W, NW = window_size, num_windows
        wins = [tensor[n * step_size : n * step_size + W] for n in range(NW)]
        stacked = jnp.stack(wins, axis=-1)               # (W, B, E, NW)
        traj_soa = jnp.transpose(stacked, (2, 0, 1, 3)).reshape(E, W, B * NW)

    P = B * NW                                           # problems (lanes)
    P_pad_min = _round_up(P, 128)
    Pt = min(P_pad_min, 1024)                            # lane tile per grid step
    P_pad = _round_up(P, Pt)

    traj_soa = jnp.pad(traj_soa, ((0, 0), (0, 0), (0, P_pad - P)))

    noise = noise.astype(jnp.float32)                    # (B, NW, E, E)
    noise_soa = jnp.transpose(noise, (2, 3, 0, 1)).reshape(E, E, P)
    if P_pad > P:
        eye_pad = jnp.broadcast_to(
            jnp.eye(E, dtype=jnp.float32)[:, :, None], (E, E, P_pad - P)
        )
        noise_soa = jnp.concatenate([noise_soa, eye_pad], axis=-1)

    cov_weights = cov_weights.astype(jnp.float32)        # (E, E)

    kernel = functools.partial(_entropy_kernel, weight_method=weight_method)
    half_ld = pl.pallas_call(
        kernel,
        out_shape=jax.ShapeDtypeStruct((1, P_pad), jnp.float32),
        grid=(P_pad // Pt,),
        in_specs=[
            pl.BlockSpec((E, W, Pt), lambda p: (0, 0, p)),
            pl.BlockSpec(memory_space=pltpu.MemorySpace.SMEM),
            pl.BlockSpec((E, E, Pt), lambda p: (0, 0, p)),
        ],
        out_specs=pl.BlockSpec((1, Pt), lambda p: (0, p)),
        compiler_params=pltpu.CompilerParams(dimension_semantics=("parallel",)),
    )(traj_soa, cov_weights, noise_soa)

    # S = mean over windows of 0.5 * logdet   (tiny reduce, done in XLA)
    return jnp.mean(half_ld[0, :P].reshape(B, NW), axis=1)   # (B,)


def _reference(tensor, explr_dim, cov_weights, noise, *, full_dim, window_size,
               step_size, num_windows, weight_method):
    """Pure-JAX reference mirroring the PyTorch forward (logdet_method='abs')."""
    if not full_dim:
        tensor = tensor[:, :, explr_dim]
    traj = jnp.transpose(tensor, (1, 0, 2))
    starts = [n * step_size for n in range(num_windows)]
    windows = jnp.stack([traj[:, s : s + window_size, :] for s in starts], axis=1)
    traj = jnp.transpose(windows, (0, 1, 3, 2))          # (B, NW, E, W)
    Xc = traj - jnp.mean(traj, axis=-1, keepdims=True)
    cov = (1.0 / (traj.shape[-1] - 1)) * jnp.einsum("bnew,bnfw->bnef", Xc, Xc)
    if "quad" in weight_method:
        C = jnp.einsum("ef,bnfg,gh->bneh", cov_weights, cov, cov_weights)
    else:
        C = cov * cov_weights
    C = C + noise
    _, logdet = jnp.linalg.slogdet(C)
    return jnp.mean(0.5 * logdet, axis=1)


if __name__ == "__main__":
    # Small, deterministic problem consistent with the module:
    #   tensor: (T, B, D_full) = (20, 2, 6), explr_size E = 4,
    #   window_size = 8, step_size = 4  ->  num_windows = 4
    T, B, D_full = 20, 2, 6
    E, window_size, step_size = 4, 8, 4
    num_windows = (T - window_size) // step_size + 1   # 4
    weight_method = "quad"

    key = jax.random.PRNGKey(0)
    k_x, k_noise = jax.random.split(key)

    x = jax.random.normal(k_x, (T, B, D_full), dtype=jnp.float32)

    # deterministic "buffers" from __init__
    explr_dim = jnp.array([0, 2, 3, 5], dtype=jnp.int32)          # E = 4
    cov_weights = jnp.eye(E, dtype=jnp.float32) + 0.05            # (E, E)
    # self.noise = Normal(zeros(E,E), 1e-8*ones(E,E)); sample([B, NW])
    noise = jax.random.normal(k_noise, (B, num_windows, E, E), dtype=jnp.float32) * 1e-8

    S = get_entropy_forward(
        x, explr_dim, cov_weights, noise,
        full_dim=False, window_size=window_size, step_size=step_size,
        num_windows=num_windows, weight_method=weight_method,
    )
    S = jax.block_until_ready(S)

    S_ref = _reference(
        x, explr_dim, cov_weights, noise,
        full_dim=False, window_size=window_size, step_size=step_size,
        num_windows=num_windows, weight_method=weight_method,
    )
    np.testing.assert_allclose(np.asarray(S), np.asarray(S_ref), rtol=5e-2, atol=5e-2)

    print("KERNEL_OK")
</pallas_src>

<mosaic_0001>
module attributes {stable_mosaic.version = 11 : i64} {
  func.func @_entropy_kernel(%arg0: i32, %arg1: memref<4x8x128xf32, #tpu.memory_space<vmem>>, %arg2: memref<4x4xf32, #tpu.memory_space<smem>>, %arg3: memref<4x4x128xf32, #tpu.memory_space<vmem>>, %arg4: memref<1x128xf32, #tpu.memory_space<vmem>>) attributes {dimension_semantics = [#tpu.dimension_semantics<parallel>], iteration_bounds = array<i64: 1>, scalar_prefetch = 0 : i64, scratch_operands = 0 : i64, tpu.core_type = #tpu.core_type<tc>, window_params = [{transform_indices = @transform_0, window_bounds = array<i64: 4, 8, 128>}, {transform_indices = @transform_1, window_bounds = array<i64: 4, 4>}, {transform_indices = @transform_2, window_bounds = array<i64: 4, 4, 128>}, {transform_indices = @transform_3, window_bounds = array<i64: 1, 128>}]} {
    %c0 = arith.constant 0 : index
    %c0_0 = arith.constant 0 : index
    %c0_1 = arith.constant 0 : index
    %0 = vector.load %arg1[%c0, %c0_0, %c0_1] : memref<4x8x128xf32, #tpu.memory_space<vmem>>, vector<4x8x128xf32>
    %cst = arith.constant dense<0.000000e+00> : vector<4x128xf32>
    %1 = vector.multi_reduction <add>, %0, %cst [1] : vector<4x8x128xf32> to vector<4x128xf32>
    %2 = vector.shape_cast %1 : vector<4x128xf32> to vector<4x1x128xf32>
    %cst_2 = arith.constant 8.000000e+00 : f32
    %3 = vector.broadcast %cst_2 : f32 to vector<4x1x128xf32>
    %4 = arith.divf %2, %3 : vector<4x1x128xf32>
    %5 = vector.broadcast %4 : vector<4x1x128xf32> to vector<4x8x128xf32>
    %6 = arith.subf %0, %5 : vector<4x8x128xf32>
    %7 = vector.extract_strided_slice %6 {offsets = [0, 0, 0], sizes = [1, 8, 128], strides = [1, 1, 1]} : vector<4x8x128xf32> to vector<1x8x128xf32>
    %8 = vector.shape_cast %7 : vector<1x8x128xf32> to vector<8x128xf32>
    %9 = vector.extract_strided_slice %6 {offsets = [1, 0, 0], sizes = [1, 8, 128], strides = [1, 1, 1]} : vector<4x8x128xf32> to vector<1x8x128xf32>
    %10 = vector.shape_cast %9 : vector<1x8x128xf32> to vector<8x128xf32>
    %11 = vector.extract_strided_slice %6 {offsets = [2, 0, 0], sizes = [1, 8, 128], strides = [1, 1, 1]} : vector<4x8x128xf32> to vector<1x8x128xf32>
    %12 = vector.shape_cast %11 : vector<1x8x128xf32> to vector<8x128xf32>
    %13 = vector.extract_strided_slice %6 {offsets = [3, 0, 0], sizes = [1, 8, 128], strides = [1, 1, 1]} : vector<4x8x128xf32> to vector<1x8x128xf32>
    %14 = vector.shape_cast %13 : vector<1x8x128xf32> to vector<8x128xf32>
    %15 = arith.mulf %8, %8 : vector<8x128xf32>
    %cst_3 = arith.constant dense<0.000000e+00> : vector<128xf32>
    %16 = vector.multi_reduction <add>, %15, %cst_3 [0] : vector<8x128xf32> to vector<128xf32>
    %17 = vector.shape_cast %16 : vector<128xf32> to vector<1x128xf32>
    %cst_4 = arith.constant 0.142857149 : f32
    %18 = vector.broadcast %cst_4 : f32 to vector<1x128xf32>
    %19 = arith.mulf %18, %17 : vector<1x128xf32>
    %20 = arith.mulf %8, %10 : vector<8x128xf32>
    %cst_5 = arith.constant dense<0.000000e+00> : vector<128xf32>
    %21 = vector.multi_reduction <add>, %20, %cst_5 [0] : vector<8x128xf32> to vector<128xf32>
    %22 = vector.shape_cast %21 : vector<128xf32> to vector<1x128xf32>
    %cst_6 = arith.constant 0.142857149 : f32
    %23 = vector.broadcast %cst_6 : f32 to vector<1x128xf32>
    %24 = arith.mulf %23, %22 : vector<1x128xf32>
    %25 = arith.mulf %8, %12 : vector<8x128xf32>
    %cst_7 = arith.constant dense<0.000000e+00> : vector<128xf32>
    %26 = vector.multi_reduction <add>, %25, %cst_7 [0] : vector<8x128xf32> to vector<128xf32>
    %27 = vector.shape_cast %26 : vector<128xf32> to vector<1x128xf32>
    %cst_8 = arith.constant 0.142857149 : f32
    %28 = vector.broadcast %cst_8 : f32 to vector<1x128xf32>
    %29 = arith.mulf %28, %27 : vector<1x128xf32>
    %30 = arith.mulf %8, %14 : vector<8x128xf32>
    %cst_9 = arith.constant dense<0.000000e+00> : vector<128xf32>
    %31 = vector.multi_reduction <add>, %30, %cst_9 [0] : vector<8x128xf32> to vector<128xf32>
    %32 = vector.shape_cast %31 : vector<128xf32> to vector<1x128xf32>
    %cst_10 = arith.constant 0.142857149 : f32
    %33 = vector.broadcast %cst_10 : f32 to vector<1x128xf32>
    %34 = arith.mulf %33, %32 : vector<1x128xf32>
    %35 = arith.mulf %10, %10 : vector<8x128xf32>
    %cst_11 = arith.constant dense<0.000000e+00> : vector<128xf32>
    %36 = vector.multi_reduction <add>, %35, %cst_11 [0] : vector<8x128xf32> to vector<128xf32>
    %37 = vector.shape_cast %36 : vector<128xf32> to vector<1x128xf32>
    %cst_12 = arith.constant 0.142857149 : f32
    %38 = vector.broadcast %cst_12 : f32 to vector<1x128xf32>
    %39 = arith.mulf %38, %37 : vector<1x128xf32>
    %40 = arith.mulf %10, %12 : vector<8x128xf32>
    %cst_13 = arith.constant dense<0.000000e+00> : vector<128xf32>
    %41 = vector.multi_reduction <add>, %40, %cst_13 [0] : vector<8x128xf32> to vector<128xf32>
    %42 = vector.shape_cast %41 : vector<128xf32> to vector<1x128xf32>
    %cst_14 = arith.constant 0.142857149 : f32
    %43 = vector.broadcast %cst_14 : f32 to vector<1x128xf32>
    %44 = arith.mulf %43, %42 : vector<1x128xf32>
    %45 = arith.mulf %10, %14 : vector<8x128xf32>
    %cst_15 = arith.constant dense<0.000000e+00> : vector<128xf32>
    %46 = vector.multi_reduction <add>, %45, %cst_15 [0] : vector<8x128xf32> to vector<128xf32>
    %47 = vector.shape_cast %46 : vector<128xf32> to vector<1x128xf32>
    %cst_16 = arith.constant 0.142857149 : f32
    %48 = vector.broadcast %cst_16 : f32 to vector<1x128xf32>
    %49 = arith.mulf %48, %47 : vector<1x128xf32>
    %50 = arith.mulf %12, %12 : vector<8x128xf32>
    %cst_17 = arith.constant dense<0.000000e+00> : vector<128xf32>
    %51 = vector.multi_reduction <add>, %50, %cst_17 [0] : vector<8x128xf32> to vector<128xf32>
    %52 = vector.shape_cast %51 : vector<128xf32> to vector<1x128xf32>
    %cst_18 = arith.constant 0.142857149 : f32
    %53 = vector.broadcast %cst_18 : f32 to vector<1x128xf32>
    %54 = arith.mulf %53, %52 : vector<1x128xf32>
    %55 = arith.mulf %12, %14 : vector<8x128xf32>
    %cst_19 = arith.constant dense<0.000000e+00> : vector<128xf32>
    %56 = vector.multi_reduction <add>, %55, %cst_19 [0] : vector<8x128xf32> to vector<128xf32>
    %57 = vector.shape_cast %56 : vector<128xf32> to vector<1x128xf32>
    %cst_20 = arith.constant 0.142857149 : f32
    %58 = vector.broadcast %cst_20 : f32 to vector<1x128xf32>
    %59 = arith.mulf %58, %57 : vector<1x128xf32>
    %60 = arith.mulf %14, %14 : vector<8x128xf32>
    %cst_21 = arith.constant dense<0.000000e+00> : vector<128xf32>
    %61 = vector.multi_reduction <add>, %60, %cst_21 [0] : vector<8x128xf32> to vector<128xf32>
    %62 = vector.shape_cast %61 : vector<128xf32> to vector<1x128xf32>
    %cst_22 = arith.constant 0.142857149 : f32
    %63 = vector.broadcast %cst_22 : f32 to vector<1x128xf32>
    %64 = arith.mulf %63, %62 : vector<1x128xf32>
    %c0_23 = arith.constant 0 : index
    %c0_24 = arith.constant 0 : index
    %65 = memref.load %arg2[%c0_23, %c0_24] : memref<4x4xf32, #tpu.memory_space<smem>>
    %c0_25 = arith.constant 0 : index
    %c1 = arith.constant 1 : index
    %66 = memref.load %arg2[%c0_25, %c1] : memref<4x4xf32, #tpu.memory_space<smem>>
    %c0_26 = arith.constant 0 : index
    %c2 = arith.constant 2 : index
    %67 = memref.load %arg2[%c0_26, %c2] : memref<4x4xf32, #tpu.memory_space<smem>>
    %c0_27 = arith.constant 0 : index
    %c3 = arith.constant 3 : index
    %68 = memref.load %arg2[%c0_27, %c3] : memref<4x4xf32, #tpu.memory_space<smem>>
    %c1_28 = arith.constant 1 : index
    %c0_29 = arith.constant 0 : index
    %69 = memref.load %arg2[%c1_28, %c0_29] : memref<4x4xf32, #tpu.memory_space<smem>>
    %c1_30 = arith.constant 1 : index
    %c1_31 = arith.constant 1 : index
    %70 = memref.load %arg2[%c1_30, %c1_31] : memref<4x4xf32, #tpu.memory_space<smem>>
    %c1_32 = arith.constant 1 : index
    %c2_33 = arith.constant 2 : index
    %71 = memref.load %arg2[%c1_32, %c2_33] : memref<4x4xf32, #tpu.memory_space<smem>>
    %c1_34 = arith.constant 1 : index
    %c3_35 = arith.constant 3 : index
    %72 = memref.load %arg2[%c1_34, %c3_35] : memref<4x4xf32, #tpu.memory_space<smem>>
    %c2_36 = arith.constant 2 : index
    %c0_37 = arith.constant 0 : index
    %73 = memref.load %arg2[%c2_36, %c0_37] : memref<4x4xf32, #tpu.memory_space<smem>>
    %c2_38 = arith.constant 2 : index
    %c1_39 = arith.constant 1 : index
    %74 = memref.load %arg2[%c2_38, %c1_39] : memref<4x4xf32, #tpu.memory_space<smem>>
    %c2_40 = arith.constant 2 : index
    %c2_41 = arith.constant 2 : index
    %75 = memref.load %arg2[%c2_40, %c2_41] : memref<4x4xf32, #tpu.memory_space<smem>>
    %c2_42 = arith.constant 2 : index
    %c3_43 = arith.constant 3 : index
    %76 = memref.load %arg2[%c2_42, %c3_43] : memref<4x4xf32, #tpu.memory_space<smem>>
    %c3_44 = arith.constant 3 : index
    %c0_45 = arith.constant 0 : index
    %77 = memref.load %arg2[%c3_44, %c0_45] : memref<4x4xf32, #tpu.memory_space<smem>>
    %c3_46 = arith.constant 3 : index
    %c1_47 = arith.constant 1 : index
    %78 = memref.load %arg2[%c3_46, %c1_47] : memref<4x4xf32, #tpu.memory_space<smem>>
    %c3_48 = arith.constant 3 : index
    %c2_49 = arith.constant 2 : index
    %79 = memref.load %arg2[%c3_48, %c2_49] : memref<4x4xf32, #tpu.memory_space<smem>>
    %c3_50 = arith.constant 3 : index
    %c3_51 = arith.constant 3 : index
    %80 = memref.load %arg2[%c3_50, %c3_51] : memref<4x4xf32, #tpu.memory_space<smem>>
    %81 = vector.broadcast %65 : f32 to vector<1x128xf32>
    %82 = arith.mulf %81, %19 : vector<1x128xf32>
    %83 = vector.broadcast %66 : f32 to vector<1x128xf32>
    %84 = arith.mulf %83, %24 : vector<1x128xf32>
    %85 = arith.addf %82, %84 : vector<1x128xf32>
    %86 = vector.broadcast %67 : f32 to vector<1x128xf32>
    %87 = arith.mulf %86, %29 : vector<1x128xf32>
    %88 = arith.addf %85, %87 : vector<1x128xf32>
    %89 = vector.broadcast %68 : f32 to vector<1x128xf32>
    %90 = arith.mulf %89, %34 : vector<1x128xf32>
    %91 = arith.addf %88, %90 : vector<1x128xf32>
    %92 = vector.broadcast %65 : f32 to vector<1x128xf32>
    %93 = arith.mulf %92, %24 : vector<1x128xf32>
    %94 = vector.broadcast %66 : f32 to vector<1x128xf32>
    %95 = arith.mulf %94, %39 : vector<1x128xf32>
    %96 = arith.addf %93, %95 : vector<1x128xf32>
    %97 = vector.broadcast %67 : f32 to vector<1x128xf32>
    %98 = arith.mulf %97, %44 : vector<1x128xf32>
    %99 = arith.addf %96, %98 : vector<1x128xf32>
    %100 = vector.broadcast %68 : f32 to vector<1x128xf32>
    %101 = arith.mulf %100, %49 : vector<1x128xf32>
    %102 = arith.addf %99, %101 : vector<1x128xf32>
    %103 = vector.broadcast %65 : f32 to vector<1x128xf32>
    %104 = arith.mulf %103, %29 : vector<1x128xf32>
    %105 = vector.broadcast %66 : f32 to vector<1x128xf32>
    %106 = arith.mulf %105, %44 : vector<1x128xf32>
    %107 = arith.addf %104, %106 : vector<1x128xf32>
    %108 = vector.broadcast %67 : f32 to vector<1x128xf32>
    %109 = arith.mulf %108, %54 : vector<1x128xf32>
    %110 = arith.addf %107, %109 : vector<1x128xf32>
    %111 = vector.broadcast %68 : f32 to vector<1x128xf32>
    %112 = arith.mulf %111, %59 : vector<1x128xf32>
    %113 = arith.addf %110, %112 : vector<1x128xf32>
    %114 = vector.broadcast %65 : f32 to vector<1x128xf32>
    %115 = arith.mulf %114, %34 : vector<1x128xf32>
    %116 = vector.broadcast %66 : f32 to vector<1x128xf32>
    %117 = arith.mulf %116, %49 : vector<1x128xf32>
    %118 = arith.addf %115, %117 : vector<1x128xf32>
    %119 = vector.broadcast %67 : f32 to vector<1x128xf32>
    %120 = arith.mulf %119, %59 : vector<1x128xf32>
    %121 = arith.addf %118, %120 : vector<1x128xf32>
    %122 = vector.broadcast %68 : f32 to vector<1x128xf32>
    %123 = arith.mulf %122, %64 : vector<1x128xf32>
    %124 = arith.addf %121, %123 : vector<1x128xf32>
    %125 = vector.broadcast %69 : f32 to vector<1x128xf32>
    %126 = arith.mulf %125, %19 : vector<1x128xf32>
    %127 = vector.broadcast %70 : f32 to vector<1x128xf32>
    %128 = arith.mulf %127, %24 : vector<1x128xf32>
    %129 = arith.addf %126, %128 : vector<1x128xf32>
    %130 = vector.broadcast %71 : f32 to vector<1x128xf32>
    %131 = arith.mulf %130, %29 : vector<1x128xf32>
    %132 = arith.addf %129, %131 : vector<1x128xf32>
    %133 = vector.broadcast %72 : f32 to vector<1x128xf32>
    %134 = arith.mulf %133, %34 : vector<1x128xf32>
    %135 = arith.addf %132, %134 : vector<1x128xf32>
    %136 = vector.broadcast %69 : f32 to vector<1x128xf32>
    %137 = arith.mulf %136, %24 : vector<1x128xf32>
    %138 = vector.broadcast %70 : f32 to vector<1x128xf32>
    %139 = arith.mulf %138, %39 : vector<1x128xf32>
    %140 = arith.addf %137, %139 : vector<1x128xf32>
    %141 = vector.broadcast %71 : f32 to vector<1x128xf32>
    %142 = arith.mulf %141, %44 : vector<1x128xf32>
    %143 = arith.addf %140, %142 : vector<1x128xf32>
    %144 = vector.broadcast %72 : f32 to vector<1x128xf32>
    %145 = arith.mulf %144, %49 : vector<1x128xf32>
    %146 = arith.addf %143, %145 : vector<1x128xf32>
    %147 = vector.broadcast %69 : f32 to vector<1x128xf32>
    %148 = arith.mulf %147, %29 : vector<1x128xf32>
    %149 = vector.broadcast %70 : f32 to vector<1x128xf32>
    %150 = arith.mulf %149, %44 : vector<1x128xf32>
    %151 = arith.addf %148, %150 : vector<1x128xf32>
    %152 = vector.broadcast %71 : f32 to vector<1x128xf32>
    %153 = arith.mulf %152, %54 : vector<1x128xf32>
    %154 = arith.addf %151, %153 : vector<1x128xf32>
    %155 = vector.broadcast %72 : f32 to vector<1x128xf32>
    %156 = arith.mulf %155, %59 : vector<1x128xf32>
    %157 = arith.addf %154, %156 : vector<1x128xf32>
    %158 = vector.broadcast %69 : f32 to vector<1x128xf32>
    %159 = arith.mulf %158, %34 : vector<1x128xf32>
    %160 = vector.broadcast %70 : f32 to vector<1x128xf32>
    %161 = arith.mulf %160, %49 : vector<1x128xf32>
    %162 = arith.addf %159, %161 : vector<1x128xf32>
    %163 = vector.broadcast %71 : f32 to vector<1x128xf32>
    %164 = arith.mulf %163, %59 : vector<1x128xf32>
    %165 = arith.addf %162, %164 : vector<1x128xf32>
    %166 = vector.broadcast %72 : f32 to vector<1x128xf32>
    %167 = arith.mulf %166, %64 : vector<1x128xf32>
    %168 = arith.addf %165, %167 : vector<1x128xf32>
    %169 = vector.broadcast %73 : f32 to vector<1x128xf32>
    %170 = arith.mulf %169, %19 : vector<1x128xf32>
    %171 = vector.broadcast %74 : f32 to vector<1x128xf32>
    %172 = arith.mulf %171, %24 : vector<1x128xf32>
    %173 = arith.addf %170, %172 : vector<1x128xf32>
    %174 = vector.broadcast %75 : f32 to vector<1x128xf32>
    %175 = arith.mulf %174, %29 : vector<1x128xf32>
    %176 = arith.addf %173, %175 : vector<1x128xf32>
    %177 = vector.broadcast %76 : f32 to vector<1x128xf32>
    %178 = arith.mulf %177, %34 : vector<1x128xf32>
    %179 = arith.addf %176, %178 : vector<1x128xf32>
    %180 = vector.broadcast %73 : f32 to vector<1x128xf32>
    %181 = arith.mulf %180, %24 : vector<1x128xf32>
    %182 = vector.broadcast %74 : f32 to vector<1x128xf32>
    %183 = arith.mulf %182, %39 : vector<1x128xf32>
    %184 = arith.addf %181, %183 : vector<1x128xf32>
    %185 = vector.broadcast %75 : f32 to vector<1x128xf32>
    %186 = arith.mulf %185, %44 : vector<1x128xf32>
    %187 = arith.addf %184, %186 : vector<1x128xf32>
    %188 = vector.broadcast %76 : f32 to vector<1x128xf32>
    %189 = arith.mulf %188, %49 : vector<1x128xf32>
    %190 = arith.addf %187, %189 : vector<1x128xf32>
    %191 = vector.broadcast %73 : f32 to vector<1x128xf32>
    %192 = arith.mulf %191, %29 : vector<1x128xf32>
    %193 = vector.broadcast %74 : f32 to vector<1x128xf32>
    %194 = arith.mulf %193, %44 : vector<1x128xf32>
    %195 = arith.addf %192, %194 : vector<1x128xf32>
    %196 = vector.broadcast %75 : f32 to vector<1x128xf32>
    %197 = arith.mulf %196, %54 : vector<1x128xf32>
    %198 = arith.addf %195, %197 : vector<1x128xf32>
    %199 = vector.broadcast %76 : f32 to vector<1x128xf32>
    %200 = arith.mulf %199, %59 : vector<1x128xf32>
    %201 = arith.addf %198, %200 : vector<1x128xf32>
    %202 = vector.broadcast %73 : f32 to vector<1x128xf32>
    %203 = arith.mulf %202, %34 : vector<1x128xf32>
    %204 = vector.broadcast %74 : f32 to vector<1x128xf32>
    %205 = arith.mulf %204, %49 : vector<1x128xf32>
    %206 = arith.addf %203, %205 : vector<1x128xf32>
    %207 = vector.broadcast %75 : f32 to vector<1x128xf32>
    %208 = arith.mulf %207, %59 : vector<1x128xf32>
    %209 = arith.addf %206, %208 : vector<1x128xf32>
    %210 = vector.broadcast %76 : f32 to vector<1x128xf32>
    %211 = arith.mulf %210, %64 : vector<1x128xf32>
    %212 = arith.addf %209, %211 : vector<1x128xf32>
    %213 = vector.broadcast %77 : f32 to vector<1x128xf32>
    %214 = arith.mulf %213, %19 : vector<1x128xf32>
    %215 = vector.broadcast %78 : f32 to vector<1x128xf32>
    %216 = arith.mulf %215, %24 : vector<1x128xf32>
    %217 = arith.addf %214, %216 : vector<1x128xf32>
    %218 = vector.broadcast %79 : f32 to vector<1x128xf32>
    %219 = arith.mulf %218, %29 : vector<1x128xf32>
    %220 = arith.addf %217, %219 : vector<1x128xf32>
    %221 = vector.broadcast %80 : f32 to vector<1x128xf32>
    %222 = arith.mulf %221, %34 : vector<1x128xf32>
    %223 = arith.addf %220, %222 : vector<1x128xf32>
    %224 = vector.broadcast %77 : f32 to vector<1x128xf32>
    %225 = arith.mulf %224, %24 : vector<1x128xf32>
    %226 = vector.broadcast %78 : f32 to vector<1x128xf32>
    %227 = arith.mulf %226, %39 : vector<1x128xf32>
    %228 = arith.addf %225, %227 : vector<1x128xf32>
    %229 = vector.broadcast %79 : f32 to vector<1x128xf32>
    %230 = arith.mulf %229, %44 : vector<1x128xf32>
    %231 = arith.addf %228, %230 : vector<1x128xf32>
    %232 = vector.broadcast %80 : f32 to vector<1x128xf32>
    %233 = arith.mulf %232, %49 : vector<1x128xf32>
    %234 = arith.addf %231, %233 : vector<1x128xf32>
    %235 = vector.broadcast %77 : f32 to vector<1x128xf32>
    %236 = arith.mulf %235, %29 : vector<1x128xf32>
    %237 = vector.broadcast %78 : f32 to vector<1x128xf32>
    %238 = arith.mulf %237, %44 : vector<1x128xf32>
    %239 = arith.addf %236, %238 : vector<1x128xf32>
    %240 = vector.broadcast %79 : f32 to vector<1x128xf32>
    %241 = arith.mulf %240, %54 : vector<1x128xf32>
    %242 = arith.addf %239, %241 : vector<1x128xf32>
    %243 = vector.broadcast %80 : f32 to vector<1x128xf32>
    %244 = arith.mulf %243, %59 : vector<1x128xf32>
    %245 = arith.addf %242, %244 : vector<1x128xf32>
    %246 = vector.broadcast %77 : f32 to vector<1x128xf32>
    %247 = arith.mulf %246, %34 : vector<1x128xf32>
    %248 = vector.broadcast %78 : f32 to vector<1x128xf32>
    %249 = arith.mulf %248, %49 : vector<1x128xf32>
    %250 = arith.addf %247, %249 : vector<1x128xf32>
    %251 = vector.broadcast %79 : f32 to vector<1x128xf32>
    %252 = arith.mulf %251, %59 : vector<1x128xf32>
    %253 = arith.addf %250, %252 : vector<1x128xf32>
    %254 = vector.broadcast %80 : f32 to vector<1x128xf32>
    %255 = arith.mulf %254, %64 : vector<1x128xf32>
    %256 = arith.addf %253, %255 : vector<1x128xf32>
    %257 = vector.broadcast %65 : f32 to vector<1x128xf32>
    %258 = arith.mulf %91, %257 : vector<1x128xf32>
    %259 = vector.broadcast %69 : f32 to vector<1x128xf32>
    %260 = arith.mulf %102, %259 : vector<1x128xf32>
    %261 = arith.addf %258, %260 : vector<1x128xf32>
    %262 = vector.broadcast %73 : f32 to vector<1x128xf32>
    %263 = arith.mulf %113, %262 : vector<1x128xf32>
    %264 = arith.addf %261, %263 : vector<1x128xf32>
    %265 = vector.broadcast %77 : f32 to vector<1x128xf32>
    %266 = arith.mulf %124, %265 : vector<1x128xf32>
    %267 = arith.addf %264, %266 : vector<1x128xf32>
    %268 = vector.broadcast %66 : f32 to vector<1x128xf32>
    %269 = arith.mulf %91, %268 : vector<1x128xf32>
    %270 = vector.broadcast %70 : f32 to vector<1x128xf32>
    %271 = arith.mulf %102, %270 : vector<1x128xf32>
    %272 = arith.addf %269, %271 : vector<1x128xf32>
    %273 = vector.broadcast %74 : f32 to vector<1x128xf32>
    %274 = arith.mulf %113, %273 : vector<1x128xf32>
    %275 = arith.addf %272, %274 : vector<1x128xf32>
    %276 = vector.broadcast %78 : f32 to vector<1x128xf32>
    %277 = arith.mulf %124, %276 : vector<1x128xf32>
    %278 = arith.addf %275, %277 : vector<1x128xf32>
    %279 = vector.broadcast %67 : f32 to vector<1x128xf32>
    %280 = arith.mulf %91, %279 : vector<1x128xf32>
    %281 = vector.broadcast %71 : f32 to vector<1x128xf32>
    %282 = arith.mulf %102, %281 : vector<1x128xf32>
    %283 = arith.addf %280, %282 : vector<1x128xf32>
    %284 = vector.broadcast %75 : f32 to vector<1x128xf32>
    %285 = arith.mulf %113, %284 : vector<1x128xf32>
    %286 = arith.addf %283, %285 : vector<1x128xf32>
    %287 = vector.broadcast %79 : f32 to vector<1x128xf32>
    %288 = arith.mulf %124, %287 : vector<1x128xf32>
    %289 = arith.addf %286, %288 : vector<1x128xf32>
    %290 = vector.broadcast %68 : f32 to vector<1x128xf32>
    %291 = arith.mulf %91, %290 : vector<1x128xf32>
    %292 = vector.broadcast %72 : f32 to vector<1x128xf32>
    %293 = arith.mulf %102, %292 : vector<1x128xf32>
    %294 = arith.addf %291, %293 : vector<1x128xf32>
    %295 = vector.broadcast %76 : f32 to vector<1x128xf32>
    %296 = arith.mulf %113, %295 : vector<1x128xf32>
    %297 = arith.addf %294, %296 : vector<1x128xf32>
    %298 = vector.broadcast %80 : f32 to vector<1x128xf32>
    %299 = arith.mulf %124, %298 : vector<1x128xf32>
    %300 = arith.addf %297, %299 : vector<1x128xf32>
    %301 = vector.broadcast %65 : f32 to vector<1x128xf32>
    %302 = arith.mulf %135, %301 : vector<1x128xf32>
    %303 = vector.broadcast %69 : f32 to vector<1x128xf32>
    %304 = arith.mulf %146, %303 : vector<1x128xf32>
    %305 = arith.addf %302, %304 : vector<1x128xf32>
    %306 = vector.broadcast %73 : f32 to vector<1x128xf32>
    %307 = arith.mulf %157, %306 : vector<1x128xf32>
    %308 = arith.addf %305, %307 : vector<1x128xf32>
    %309 = vector.broadcast %77 : f32 to vector<1x128xf32>
    %310 = arith.mulf %168, %309 : vector<1x128xf32>
    %311 = arith.addf %308, %310 : vector<1x128xf32>
    %312 = vector.broadcast %66 : f32 to vector<1x128xf32>
    %313 = arith.mulf %135, %312 : vector<1x128xf32>
    %314 = vector.broadcast %70 : f32 to vector<1x128xf32>
    %315 = arith.mulf %146, %314 : vector<1x128xf32>
    %316 = arith.addf %313, %315 : vector<1x128xf32>
    %317 = vector.broadcast %74 : f32 to vector<1x128xf32>
    %318 = arith.mulf %157, %317 : vector<1x128xf32>
    %319 = arith.addf %316, %318 : vector<1x128xf32>
    %320 = vector.broadcast %78 : f32 to vector<1x128xf32>
    %321 = arith.mulf %168, %320 : vector<1x128xf32>
    %322 = arith.addf %319, %321 : vector<1x128xf32>
    %323 = vector.broadcast %67 : f32 to vector<1x128xf32>
    %324 = arith.mulf %135, %323 : vector<1x128xf32>
    %325 = vector.broadcast %71 : f32 to vector<1x128xf32>
    %326 = arith.mulf %146, %325 : vector<1x128xf32>
    %327 = arith.addf %324, %326 : vector<1x128xf32>
    %328 = vector.broadcast %75 : f32 to vector<1x128xf32>
    %329 = arith.mulf %157, %328 : vector<1x128xf32>
    %330 = arith.addf %327, %329 : vector<1x128xf32>
    %331 = vector.broadcast %79 : f32 to vector<1x128xf32>
    %332 = arith.mulf %168, %331 : vector<1x128xf32>
    %333 = arith.addf %330, %332 : vector<1x128xf32>
    %334 = vector.broadcast %68 : f32 to vector<1x128xf32>
    %335 = arith.mulf %135, %334 : vector<1x128xf32>
    %336 = vector.broadcast %72 : f32 to vector<1x128xf32>
    %337 = arith.mulf %146, %336 : vector<1x128xf32>
    %338 = arith.addf %335, %337 : vector<1x128xf32>
    %339 = vector.broadcast %76 : f32 to vector<1x128xf32>
    %340 = arith.mulf %157, %339 : vector<1x128xf32>
    %341 = arith.addf %338, %340 : vector<1x128xf32>
    %342 = vector.broadcast %80 : f32 to vector<1x128xf32>
    %343 = arith.mulf %168, %342 : vector<1x128xf32>
    %344 = arith.addf %341, %343 : vector<1x128xf32>
    %345 = vector.broadcast %65 : f32 to vector<1x128xf32>
    %346 = arith.mulf %179, %345 : vector<1x128xf32>
    %347 = vector.broadcast %69 : f32 to vector<1x128xf32>
    %348 = arith.mulf %190, %347 : vector<1x128xf32>
    %349 = arith.addf %346, %348 : vector<1x128xf32>
    %350 = vector.broadcast %73 : f32 to vector<1x128xf32>
    %351 = arith.mulf %201, %350 : vector<1x128xf32>
    %352 = arith.addf %349, %351 : vector<1x128xf32>
    %353 = vector.broadcast %77 : f32 to vector<1x128xf32>
    %354 = arith.mulf %212, %353 : vector<1x128xf32>
    %355 = arith.addf %352, %354 : vector<1x128xf32>
    %356 = vector.broadcast %66 : f32 to vector<1x128xf32>
    %357 = arith.mulf %179, %356 : vector<1x128xf32>
    %358 = vector.broadcast %70 : f32 to vector<1x128xf32>
    %359 = arith.mulf %190, %358 : vector<1x128xf32>
    %360 = arith.addf %357, %359 : vector<1x128xf32>
    %361 = vector.broadcast %74 : f32 to vector<1x128xf32>
    %362 = arith.mulf %201, %361 : vector<1x128xf32>
    %363 = arith.addf %360, %362 : vector<1x128xf32>
    %364 = vector.broadcast %78 : f32 to vector<1x128xf32>
    %365 = arith.mulf %212, %364 : vector<1x128xf32>
    %366 = arith.addf %363, %365 : vector<1x128xf32>
    %367 = vector.broadcast %67 : f32 to vector<1x128xf32>
    %368 = arith.mulf %179, %367 : vector<1x128xf32>
    %369 = vector.broadcast %71 : f32 to vector<1x128xf32>
    %370 = arith.mulf %190, %369 : vector<1x128xf32>
    %371 = arith.addf %368, %370 : vector<1x128xf32>
    %372 = vector.broadcast %75 : f32 to vector<1x128xf32>
    %373 = arith.mulf %201, %372 : vector<1x128xf32>
    %374 = arith.addf %371, %373 : vector<1x128xf32>
    %375 = vector.broadcast %79 : f32 to vector<1x128xf32>
    %376 = arith.mulf %212, %375 : vector<1x128xf32>
    %377 = arith.addf %374, %376 : vector<1x128xf32>
    %378 = vector.broadcast %68 : f32 to vector<1x128xf32>
    %379 = arith.mulf %179, %378 : vector<1x128xf32>
    %380 = vector.broadcast %72 : f32 to vector<1x128xf32>
    %381 = arith.mulf %190, %380 : vector<1x128xf32>
    %382 = arith.addf %379, %381 : vector<1x128xf32>
    %383 = vector.broadcast %76 : f32 to vector<1x128xf32>
    %384 = arith.mulf %201, %383 : vector<1x128xf32>
    %385 = arith.addf %382, %384 : vector<1x128xf32>
    %386 = vector.broadcast %80 : f32 to vector<1x128xf32>
    %387 = arith.mulf %212, %386 : vector<1x128xf32>
    %388 = arith.addf %385, %387 : vector<1x128xf32>
    %389 = vector.broadcast %65 : f32 to vector<1x128xf32>
    %390 = arith.mulf %223, %389 : vector<1x128xf32>
    %391 = vector.broadcast %69 : f32 to vector<1x128xf32>
    %392 = arith.mulf %234, %391 : vector<1x128xf32>
    %393 = arith.addf %390, %392 : vector<1x128xf32>
    %394 = vector.broadcast %73 : f32 to vector<1x128xf32>
    %395 = arith.mulf %245, %394 : vector<1x128xf32>
    %396 = arith.addf %393, %395 : vector<1x128xf32>
    %397 = vector.broadcast %77 : f32 to vector<1x128xf32>
    %398 = arith.mulf %256, %397 : vector<1x128xf32>
    %399 = arith.addf %396, %398 : vector<1x128xf32>
    %400 = vector.broadcast %66 : f32 to vector<1x128xf32>
    %401 = arith.mulf %223, %400 : vector<1x128xf32>
    %402 = vector.broadcast %70 : f32 to vector<1x128xf32>
    %403 = arith.mulf %234, %402 : vector<1x128xf32>
    %404 = arith.addf %401, %403 : vector<1x128xf32>
    %405 = vector.broadcast %74 : f32 to vector<1x128xf32>
    %406 = arith.mulf %245, %405 : vector<1x128xf32>
    %407 = arith.addf %404, %406 : vector<1x128xf32>
    %408 = vector.broadcast %78 : f32 to vector<1x128xf32>
    %409 = arith.mulf %256, %408 : vector<1x128xf32>
    %410 = arith.addf %407, %409 : vector<1x128xf32>
    %411 = vector.broadcast %67 : f32 to vector<1x128xf32>
    %412 = arith.mulf %223, %411 : vector<1x128xf32>
    %413 = vector.broadcast %71 : f32 to vector<1x128xf32>
    %414 = arith.mulf %234, %413 : vector<1x128xf32>
    %415 = arith.addf %412, %414 : vector<1x128xf32>
    %416 = vector.broadcast %75 : f32 to vector<1x128xf32>
    %417 = arith.mulf %245, %416 : vector<1x128xf32>
    %418 = arith.addf %415, %417 : vector<1x128xf32>
    %419 = vector.broadcast %79 : f32 to vector<1x128xf32>
    %420 = arith.mulf %256, %419 : vector<1x128xf32>
    %421 = arith.addf %418, %420 : vector<1x128xf32>
    %422 = vector.broadcast %68 : f32 to vector<1x128xf32>
    %423 = arith.mulf %223, %422 : vector<1x128xf32>
    %424 = vector.broadcast %72 : f32 to vector<1x128xf32>
    %425 = arith.mulf %234, %424 : vector<1x128xf32>
    %426 = arith.addf %423, %425 : vector<1x128xf32>
    %427 = vector.broadcast %76 : f32 to vector<1x128xf32>
    %428 = arith.mulf %245, %427 : vector<1x128xf32>
    %429 = arith.addf %426, %428 : vector<1x128xf32>
    %430 = vector.broadcast %80 : f32 to vector<1x128xf32>
    %431 = arith.mulf %256, %430 : vector<1x128xf32>
    %432 = arith.addf %429, %431 : vector<1x128xf32>
    %c0_52 = arith.constant 0 : index
    %c0_53 = arith.constant 0 : index
    %c0_54 = arith.constant 0 : index
    %433 = vector.load %arg3[%c0_52, %c0_53, %c0_54] : memref<4x4x128xf32, #tpu.memory_space<vmem>>, vector<4x4x128xf32>
    %434 = vector.extract_strided_slice %433 {offsets = [0, 0, 0], sizes = [1, 1, 128], strides = [1, 1, 1]} : vector<4x4x128xf32> to vector<1x1x128xf32>
    %435 = vector.shape_cast %434 : vector<1x1x128xf32> to vector<1x128xf32>
    %436 = arith.addf %267, %435 : vector<1x128xf32>
    %437 = vector.extract_strided_slice %433 {offsets = [0, 1, 0], sizes = [1, 1, 128], strides = [1, 1, 1]} : vector<4x4x128xf32> to vector<1x1x128xf32>
    %438 = vector.shape_cast %437 : vector<1x1x128xf32> to vector<1x128xf32>
    %439 = arith.addf %278, %438 : vector<1x128xf32>
    %440 = vector.extract_strided_slice %433 {offsets = [0, 2, 0], sizes = [1, 1, 128], strides = [1, 1, 1]} : vector<4x4x128xf32> to vector<1x1x128xf32>
    %441 = vector.shape_cast %440 : vector<1x1x128xf32> to vector<1x128xf32>
    %442 = arith.addf %289, %441 : vector<1x128xf32>
    %443 = vector.extract_strided_slice %433 {offsets = [0, 3, 0], sizes = [1, 1, 128], strides = [1, 1, 1]} : vector<4x4x128xf32> to vector<1x1x128xf32>
    %444 = vector.shape_cast %443 : vector<1x1x128xf32> to vector<1x128xf32>
    %445 = arith.addf %300, %444 : vector<1x128xf32>
    %446 = vector.extract_strided_slice %433 {offsets = [1, 0, 0], sizes = [1, 1, 128], strides = [1, 1, 1]} : vector<4x4x128xf32> to vector<1x1x128xf32>
    %447 = vector.shape_cast %446 : vector<1x1x128xf32> to vector<1x128xf32>
    %448 = arith.addf %311, %447 : vector<1x128xf32>
    %449 = vector.extract_strided_slice %433 {offsets = [1, 1, 0], sizes = [1, 1, 128], strides = [1, 1, 1]} : vector<4x4x128xf32> to vector<1x1x128xf32>
    %450 = vector.shape_cast %449 : vector<1x1x128xf32> to vector<1x128xf32>
    %451 = arith.addf %322, %450 : vector<1x128xf32>
    %452 = vector.extract_strided_slice %433 {offsets = [1, 2, 0], sizes = [1, 1, 128], strides = [1, 1, 1]} : vector<4x4x128xf32> to vector<1x1x128xf32>
    %453 = vector.shape_cast %452 : vector<1x1x128xf32> to vector<1x128xf32>
    %454 = arith.addf %333, %453 : vector<1x128xf32>
    %455 = vector.extract_strided_slice %433 {offsets = [1, 3, 0], sizes = [1, 1, 128], strides = [1, 1, 1]} : vector<4x4x128xf32> to vector<1x1x128xf32>
    %456 = vector.shape_cast %455 : vector<1x1x128xf32> to vector<1x128xf32>
    %457 = arith.addf %344, %456 : vector<1x128xf32>
    %458 = vector.extract_strided_slice %433 {offsets = [2, 0, 0], sizes = [1, 1, 128], strides = [1, 1, 1]} : vector<4x4x128xf32> to vector<1x1x128xf32>
    %459 = vector.shape_cast %458 : vector<1x1x128xf32> to vector<1x128xf32>
    %460 = arith.addf %355, %459 : vector<1x128xf32>
    %461 = vector.extract_strided_slice %433 {offsets = [2, 1, 0], sizes = [1, 1, 128], strides = [1, 1, 1]} : vector<4x4x128xf32> to vector<1x1x128xf32>
    %462 = vector.shape_cast %461 : vector<1x1x128xf32> to vector<1x128xf32>
    %463 = arith.addf %366, %462 : vector<1x128xf32>
    %464 = vector.extract_strided_slice %433 {offsets = [2, 2, 0], sizes = [1, 1, 128], strides = [1, 1, 1]} : vector<4x4x128xf32> to vector<1x1x128xf32>
    %465 = vector.shape_cast %464 : vector<1x1x128xf32> to vector<1x128xf32>
    %466 = arith.addf %377, %465 : vector<1x128xf32>
    %467 = vector.extract_strided_slice %433 {offsets = [2, 3, 0], sizes = [1, 1, 128], strides = [1, 1, 1]} : vector<4x4x128xf32> to vector<1x1x128xf32>
    %468 = vector.shape_cast %467 : vector<1x1x128xf32> to vector<1x128xf32>
    %469 = arith.addf %388, %468 : vector<1x128xf32>
    %470 = vector.extract_strided_slice %433 {offsets = [3, 0, 0], sizes = [1, 1, 128], strides = [1, 1, 1]} : vector<4x4x128xf32> to vector<1x1x128xf32>
    %471 = vector.shape_cast %470 : vector<1x1x128xf32> to vector<1x128xf32>
    %472 = arith.addf %399, %471 : vector<1x128xf32>
    %473 = vector.extract_strided_slice %433 {offsets = [3, 1, 0], sizes = [1, 1, 128], strides = [1, 1, 1]} : vector<4x4x128xf32> to vector<1x1x128xf32>
    %474 = vector.shape_cast %473 : vector<1x1x128xf32> to vector<1x128xf32>
    %475 = arith.addf %410, %474 : vector<1x128xf32>
    %476 = vector.extract_strided_slice %433 {offsets = [3, 2, 0], sizes = [1, 1, 128], strides = [1, 1, 1]} : vector<4x4x128xf32> to vector<1x1x128xf32>
    %477 = vector.shape_cast %476 : vector<1x1x128xf32> to vector<1x128xf32>
    %478 = arith.addf %421, %477 : vector<1x128xf32>
    %479 = vector.extract_strided_slice %433 {offsets = [3, 3, 0], sizes = [1, 1, 128], strides = [1, 1, 1]} : vector<4x4x128xf32> to vector<1x1x128xf32>
    %480 = vector.shape_cast %479 : vector<1x1x128xf32> to vector<1x128xf32>
    %481 = arith.addf %432, %480 : vector<1x128xf32>
    %cst_55 = arith.constant 0.000000e+00 : f32
    %482 = vector.broadcast %cst_55 : f32 to vector<1x128xf32>
    %483 = math.absf %436 : vector<1x128xf32>
    %484 = math.log %483 : vector<1x128xf32>
    %485 = arith.addf %482, %484 : vector<1x128xf32>
    %cst_56 = arith.constant 1.000000e+00 : f32
    %486 = vector.broadcast %cst_56 : f32 to vector<1x128xf32>
    %487 = arith.divf %486, %436 : vector<1x128xf32>
    %488 = arith.mulf %448, %487 : vector<1x128xf32>
    %489 = arith.mulf %488, %439 : vector<1x128xf32>
    %490 = arith.subf %451, %489 : vector<1x128xf32>
    %491 = arith.mulf %488, %442 : vector<1x128xf32>
    %492 = arith.subf %454, %491 : vector<1x128xf32>
    %493 = arith.mulf %488, %445 : vector<1x128xf32>
    %494 = arith.subf %457, %493 : vector<1x128xf32>
    %495 = arith.mulf %460, %487 : vector<1x128xf32>
    %496 = arith.mulf %495, %439 : vector<1x128xf32>
    %497 = arith.subf %463, %496 : vector<1x128xf32>
    %498 = arith.mulf %495, %442 : vector<1x128xf32>
    %499 = arith.subf %466, %498 : vector<1x128xf32>
    %500 = arith.mulf %495, %445 : vector<1x128xf32>
    %501 = arith.subf %469, %500 : vector<1x128xf32>
    %502 = arith.mulf %472, %487 : vector<1x128xf32>
    %503 = arith.mulf %502, %439 : vector<1x128xf32>
    %504 = arith.subf %475, %503 : vector<1x128xf32>
    %505 = arith.mulf %502, %442 : vector<1x128xf32>
    %506 = arith.subf %478, %505 : vector<1x128xf32>
    %507 = arith.mulf %502, %445 : vector<1x128xf32>
    %508 = arith.subf %481, %507 : vector<1x128xf32>
    %509 = math.absf %490 : vector<1x128xf32>
    %510 = math.log %509 : vector<1x128xf32>
    %511 = arith.addf %485, %510 : vector<1x128xf32>
    %cst_57 = arith.constant 1.000000e+00 : f32
    %512 = vector.broadcast %cst_57 : f32 to vector<1x128xf32>
    %513 = arith.divf %512, %490 : vector<1x128xf32>
    %514 = arith.mulf %497, %513 : vector<1x128xf32>
    %515 = arith.mulf %514, %492 : vector<1x128xf32>
    %516 = arith.subf %499, %515 : vector<1x128xf32>
    %517 = arith.mulf %514, %494 : vector<1x128xf32>
    %518 = arith.subf %501, %517 : vector<1x128xf32>
    %519 = arith.mulf %504, %513 : vector<1x128xf32>
    %520 = arith.mulf %519, %492 : vector<1x128xf32>
    %521 = arith.subf %506, %520 : vector<1x128xf32>
    %522 = arith.mulf %519, %494 : vector<1x128xf32>
    %523 = arith.subf %508, %522 : vector<1x128xf32>
    %524 = math.absf %516 : vector<1x128xf32>
    %525 = math.log %524 : vector<1x128xf32>
    %526 = arith.addf %511, %525 : vector<1x128xf32>
    %cst_58 = arith.constant 1.000000e+00 : f32
    %527 = vector.broadcast %cst_58 : f32 to vector<1x128xf32>
    %528 = arith.divf %527, %516 : vector<1x128xf32>
    %529 = arith.mulf %521, %528 : vector<1x128xf32>
    %530 = arith.mulf %529, %518 : vector<1x128xf32>
    %531 = arith.subf %523, %530 : vector<1x128xf32>
    %532 = math.absf %531 : vector<1x128xf32>
    %533 = math.log %532 : vector<1x128xf32>
    %534 = arith.addf %526, %533 : vector<1x128xf32>
    %cst_59 = arith.constant 5.000000e-01 : f32
    %535 = vector.broadcast %cst_59 : f32 to vector<1x128xf32>
    %536 = arith.mulf %535, %534 : vector<1x128xf32>
    %c0_60 = arith.constant 0 : index
    %c0_61 = arith.constant 0 : index
    %537 = vector.load %arg4[%c0_60, %c0_61] : memref<1x128xf32, #tpu.memory_space<vmem>>, vector<1x128xf32>
    tpu.vector_store %arg4[%c0_60, %c0_61], %536 {strides = array<i32>} : memref<1x128xf32, #tpu.memory_space<vmem>>, vector<1x128xf32>,
    return
  }
  func.func @transform_0(%arg0: i32) -> (i32, i32, i32) {
    %c0_i32 = arith.constant 0 : i32
    %c0_i32_0 = arith.constant 0 : i32
    %c0_i32_1 = arith.constant 0 : i32
    return %c0_i32, %c0_i32_0, %arg0 : i32, i32, i32
  }
  func.func @transform_1(%arg0: i32) -> (i32, i32) {
    %c0_i32 = arith.constant 0 : i32
    %c0_i32_0 = arith.constant 0 : i32
    %c0_i32_1 = arith.constant 0 : i32
    return %c0_i32, %c0_i32_0 : i32, i32
  }
  func.func @transform_2(%arg0: i32) -> (i32, i32, i32) {
    %c0_i32 = arith.constant 0 : i32
    %c0_i32_0 = arith.constant 0 : i32
    %c0_i32_1 = arith.constant 0 : i32
    return %c0_i32, %c0_i32_0, %arg0 : i32, i32, i32
  }
  func.func @transform_3(%arg0: i32) -> (i32, i32) {
    %c0_i32 = arith.constant 0 : i32
    %c0_i32_0 = arith.constant 0 : i32
    return %c0_i32, %arg0 : i32, i32
  }
}

</mosaic_0001>

<bundles_post_ra>
// kernel: tpu_custom_call.1
= control target key start
LH: loop header
LB: loop body
LE: loop exit
PB: predicated region body
PF: predicated region fallthrough
CT: control target
= control target key end

     0   :  { %8 = vsyncpa [#allocation3], 0  ;;  %s1223_s0 = inlined_call_operand.hbm [shape: f32[4,8,128], index: 0, kind: input, shape index: {}]   ;;  %s1224_s1 = inlined_call_operand.hbm [shape: f32[4,4], index: 1, kind: input, shape index: {}]   ;;  %s1225_s2 = inlined_call_operand.hbm [shape: f32[4,4,128], index: 2, kind: input, shape index: {}]   ;;  %s1226_s3 = inlined_call_operand.hbm [shape: f32[1,128], index: 3, kind: output, shape index: {}]  }
   0x1   :  { %9 = vsyncpa [#allocation5], 0 }
   0x2   :  { %10 = vsyncpa [#allocation8], 0 }
   0x3   :  { %11 = vsyncpa [#allocation4], 0  ;;  %s712_s12 = smov [#allocation2]   ;;  %s628_s16 = scalar_lea.hbm %s1223_s0, 512 }
   0x4   :  { %s17_s13 = sshll.u32 %s712_s12, 4  ;;  %p629_p0 = scmp.ne.s32.totalorder %s1223_s0, %s628_s16  ;;  %s18_s13 = int_to_ptr.vmem [resolvable:$true] %s17_s13 }
   0x5   :  { %p632_p1 = scmp.lt.u32.totalorder %s628_s16, %s1223_s0 }
   0x7   :  { %p634_p2 = pnand %p632_p1, %p629_p0 }
   0x9   :  { %637 = shalt.err (!%p634_p2)
}
   0xa   :  { %s638_s21 = scalar_lea.vmem %s18_s13, 512  ;;  %p643_p4 = scmp.lt.s32.totalorder %s18_s13, %s18_s13 }
   0xb   :  { %p639_p3 = scmp.ne.s32.totalorder %s18_s13, %s638_s21  ;;  %p644_p5 = scmp.lt.s32.totalorder %s638_s21, %s638_s21 }
   0xd   :  { %p645_p6 = por %p644_p5, %p643_p4 }
   0xf   :  { %p646_p7 = pnand %p645_p6, %p639_p3 }
  0x11   :  { %649 = shalt.err (!%p646_p7)
}
  0x12   :  { %s713_s22 = smov 128   ;;  %s714_s23 = smov 8  }
  0x13   :  { %23 = dma.hbm_to_vmem [thread:$0]  %s1223_s0, 512, %s18_s13, [#allocation3], %s713_s22, %s713_s22, %s714_s23  }
  0x14   :  { %s650_s28 = scalar_lea.hbm %s1224_s1, 64 }
  0x15   :  { %p651_p8 = scmp.ne.s32.totalorder %s1224_s1, %s650_s28  ;;  %p654_p9 = scmp.lt.u32.totalorder %s650_s28, %s1224_s1 }
  0x17   :  { %p656_p10 = pnand %p654_p9, %p651_p8 }
  0x19   :  { %659 = shalt.err (!%p656_p10)
}
  0x1a   :  { %s715_s6 = smov [#allocation6]   ;;  %s716_s0 = smov [#allocation7]  }
  0x1b   :  { %31 = dma.hbm_to_smem %s1224_s1, 64, %s715_s6, [#allocation5]  }
  0x1c   :  { %s37_s9 = sshll.u32 %s716_s0, 4  ;;  %s660_s12 = scalar_lea.hbm %s1225_s2, 256  ;;  %s38_s9 = int_to_ptr.vmem [resolvable:$true] %s37_s9 }
  0x1d   :  { %p661_p11 = scmp.ne.s32.totalorder %s1225_s2, %s660_s12  ;;  %p664_p12 = scmp.lt.u32.totalorder %s660_s12, %s1225_s2 }
  0x1f   :  { %p666_p13 = pnand %p664_p12, %p661_p11 }
  0x21   :  { %669 = shalt.err (!%p666_p13)
}
  0x22   :  { %s670_s17 = scalar_lea.vmem %s38_s9, 256  ;;  %p675_p1 = scmp.lt.s32.totalorder %s38_s9, %s38_s9 }
  0x23   :  { %p671_p0 = scmp.ne.s32.totalorder %s38_s9, %s670_s17  ;;  %p676_p2 = scmp.lt.s32.totalorder %s670_s17, %s670_s17 }
  0x25   :  { %p677_p3 = por %p676_p2, %p675_p1 }
  0x27   :  { %p678_p4 = pnand %p677_p3, %p671_p0 }
  0x29   :  { %681 = shalt.err (!%p678_p4)
}
  0x2a   :  { %s717_s1 = smov 64   ;;  %s718_s18 = smov 4  }
  0x2b   :  { %43 = dma.hbm_to_vmem [thread:$0]  %s1225_s2, 256, %s38_s9, [#allocation8], %s717_s1, %s717_s1, %s718_s18  }
  0x2c   :  { %704 = dma.done.wait [#allocation3], 512  }
  0x2d   :  { %705 = vsyncadd [#allocation3], 4294966784 }
  0x2e   :  { %706 = dma.done.wait [#allocation5], 64  }
  0x2f   :  { %707 = vsyncadd [#allocation5], 4294967232 }
  0x30   :  { %708 = dma.done.wait [#allocation8], 256  }
  0x31   :  { %709 = vsyncadd [#allocation8], 4294967040 }
  0x32   :  { %53 = sfence }
  0x33   :  { %v54_v0 = vld [vmem:[#allocation2] sm:$0xff]  ;;  %v55_v1 = vld [vmem:[#allocation2 + $0x8] sm:$0xff]  ;;  %v56_v2 = vld [vmem:[#allocation2 + $0x10] sm:$0xff]  ;;  %s776_s2 = sld [smem:[#allocation6]]  ;;  %s778_s21 = sld [smem:[#allocation6 + $0x1]] }
  0x34   :  { %v57_v3 = vld [vmem:[#allocation2 + $0x18] sm:$0xff]  ;;  %v58_v4 = vrot.slane %v54_v0, 4  ;;  %v64_v5 = vrot.slane %v55_v1, 4  ;;  %v70_v6 = vrot.slane %v56_v2, 4  ;;  %s780_s22 = sld [smem:[#allocation6 + $0x2]]  ;;  %s782_s23 = sld [smem:[#allocation6 + $0x3]] }
  0x35   :  { %v76_v7 = vrot.slane %v57_v3, 4  ;;  %s784_s24 = sld [smem:[#allocation6 + $0x80]]  ;;  %s786_s25 = sld [smem:[#allocation6 + $0x81]] }
  0x36   :  { %v59_v8 = vadd.f32 %v58_v4, %v54_v0  ;;  %v65_v9 = vadd.f32 %v64_v5, %v55_v1  ;;  %v71_v10 = vadd.f32 %v70_v6, %v56_v2  ;;  %s788_s26 = sld [smem:[#allocation6 + $0x82]]  ;;  %s790_s27 = sld [smem:[#allocation6 + $0x83]] }
  0x37   :  { %v77_v11 = vadd.f32 %v76_v7, %v57_v3  ;;  %s792_s28 = sld [smem:[#allocation6 + $0x100]]  ;;  %s794_s29 = sld [smem:[#allocation6 + $0x101]] }
  0x38   :  { %v60_v12 = vrot.slane %v59_v8, 2  ;;  %v66_v13 = vrot.slane %v65_v9, 2  ;;  %v72_v14 = vrot.slane %v71_v10, 2  ;;  %s796_s30 = sld [smem:[#allocation6 + $0x102]]  ;;  %s798_s4 = sld [smem:[#allocation6 + $0x103]] }
  0x39   :  { %v78_v15 = vrot.slane %v77_v11, 2  ;;  %s800_s5 = sld [smem:[#allocation6 + $0x180]]  ;;  %s802_s6 = sld [smem:[#allocation6 + $0x181]] }
  0x3a   :  { %v61_v16 = vadd.f32 %v60_v12, %v59_v8  ;;  %v67_v17 = vadd.f32 %v66_v13, %v65_v9  ;;  %v73_v18 = vadd.f32 %v72_v14, %v71_v10  ;;  %s804_s7 = sld [smem:[#allocation6 + $0x182]]  ;;  %s824_s8 = sld [smem:[#allocation6 + $0x183]] }
  0x3b   :  { %v79_v19 = vadd.f32 %v78_v15, %v77_v11  ;;  %s719_s0 = smov [#allocation9]  }
  0x3c   :  { %v62_v20 = vrot.slane %v61_v16, 1  ;;  %v68_v21 = vrot.slane %v67_v17, 1  ;;  %v74_v22 = vrot.slane %v73_v18, 1  ;;  %s580_s9 = sshll.u32 %s719_s0, 4  ;;  %s581_s9 = int_to_ptr.vmem [resolvable:$true] %s580_s9 }
  0x3d   :  { %v80_v23 = vrot.slane %v79_v19, 1  ;;  %s682_s10 = scalar_lea.vmem %s581_s9, 16  ;;  %s686_s11 = scalar_lea.vmem %s581_s9, 32 }
  0x3e   :  { %v63_v24 = vadd.f32 %v62_v20, %v61_v16  ;;  %v69_v25 = vadd.f32 %v68_v21, %v67_v17  ;;  %v75_v26 = vadd.f32 %v74_v22, %v73_v18  ;;  %p683_p5 = scmp.ne.s32.totalorder %s581_s9, %s682_s10  ;;  %p687_p6 = scmp.lt.s32.totalorder %s581_s9, %s581_s9 }
  0x3f   :  { %v81_v27 = vadd.f32 %v80_v23, %v79_v19  ;;  %p688_p7 = scmp.lt.s32.totalorder %s686_s11, %s682_s10 }
  0x40   :  { %v83_v28 = vmul.f32 0.125, %v63_v24  ;;  %v84_v29 = vmul.f32 0.125, %v69_v25  ;;  %v85_v30 = vmul.f32 0.125, %v75_v26 }
  0x41   :  { %v86_v31 = vmul.f32 0.125, %v81_v27  ;;  %v807_v27 = vstv %s776_s2  ;;  %p689_p8 = por %p688_p7, %p687_p6 }
  0x42   :  { %v87_v32 = vsub.f32 %v54_v0, %v83_v28  ;;  %v88_v33 = vsub.f32 %v55_v1, %v84_v29  ;;  %v89_v34 = vsub.f32 %v56_v2, %v85_v30  ;;  %v810_v28 = vstv %s778_s21 }
  0x43   :  { %v90_v35 = vsub.f32 %v57_v3, %v86_v31  ;;  %v813_v29 = vstv %s780_s22  ;;  %p690_p9 = pnand %p689_p8, %p683_p5 }
  0x44   :  { %v91_v36 = vmul.f32 %v87_v32, %v87_v32  ;;  %v99_v37 = vmul.f32 %v88_v33, %v87_v32  ;;  %v107_v38 = vmul.f32 %v89_v34, %v87_v32  ;;  %v123_v39 = vmul.f32 %v88_v33, %v88_v33 }
  0x45   :  { %v131_v40 = vmul.f32 %v89_v34, %v88_v33  ;;  %v115_v41 = vmul.f32 %v90_v35, %v87_v32  ;;  %v139_v42 = vmul.f32 %v90_v35, %v88_v33  ;;  %v147_v45 = vmul.f32 %v89_v34, %v89_v34 }
  0x46   :  { %v92_v43 = vrot.slane %v91_v36, 4  ;;  %v100_v44 = vrot.slane %v99_v37, 4  ;;  %v108_v46 = vrot.slane %v107_v38, 4  ;;  %v124_v47 = vrot.slane %v123_v39, 4 }
  0x47   :  { %v132_v48 = vrot.slane %v131_v40, 4  ;;  %v116_v49 = vrot.slane %v115_v41, 4  ;;  %v140_v50 = vrot.slane %v139_v42, 4  ;;  %v148_v53 = vrot.slane %v147_v45, 4 }
  0x48   :  { %v93_v51 = vadd.f32 %v92_v43, %v91_v36  ;;  %v101_v52 = vadd.f32 %v100_v44, %v99_v37  ;;  %v155_v54 = vmul.f32 %v90_v35, %v89_v34  ;;  %v109_v55 = vadd.f32 %v108_v46, %v107_v38 }
  0x49   :  { %v125_v56 = vadd.f32 %v124_v47, %v123_v39  ;;  %v133_v57 = vadd.f32 %v132_v48, %v131_v40  ;;  %v117_v58 = vadd.f32 %v116_v49, %v115_v41  ;;  %v141_v59 = vadd.f32 %v140_v50, %v139_v42 }
  0x4a   :  { %v163_v60 = vmul.f32 %v90_v35, %v90_v35  ;;  %v94_v61 = vrot.slane %v93_v51, 2  ;;  %v102_v62 = vrot.slane %v101_v52, 2  ;;  %v149_v63 = vadd.f32 %v148_v53, %v147_v45 }
  0x4b   :  { %v156_v0 = vrot.slane %v155_v54, 4  ;;  %v110_v1 = vrot.slane %v109_v55, 2  ;;  %v126_v2 = vrot.slane %v125_v56, 2  ;;  %v134_v3 = vrot.slane %v133_v57, 2 }
  0x4c   :  { %v118_v4 = vrot.slane %v117_v58, 2  ;;  %v142_v5 = vrot.slane %v141_v59, 2  ;;  %v164_v6 = vrot.slane %v163_v60, 4  ;;  %v95_v7 = vadd.f32 %v94_v61, %v93_v51 }
  0x4d   :  { %v103_v8 = vadd.f32 %v102_v62, %v101_v52  ;;  %v150_v9 = vrot.slane %v149_v63, 2  ;;  %v157_v10 = vadd.f32 %v156_v0, %v155_v54  ;;  %v111_v11 = vadd.f32 %v110_v1, %v109_v55 }
  0x4e   :  { %v127_v12 = vadd.f32 %v126_v2, %v125_v56  ;;  %v135_v13 = vadd.f32 %v134_v3, %v133_v57  ;;  %v119_v14 = vadd.f32 %v118_v4, %v117_v58  ;;  %v143_v15 = vadd.f32 %v142_v5, %v141_v59 }
  0x4f   :  { %v165_v16 = vadd.f32 %v164_v6, %v163_v60  ;;  %v96_v17 = vrot.slane %v95_v7, 1  ;;  %v104_v18 = vrot.slane %v103_v8, 1  ;;  %v151_v19 = vadd.f32 %v150_v9, %v149_v63 }
  0x50   :  { %v158_v20 = vrot.slane %v157_v10, 2  ;;  %v112_v21 = vrot.slane %v111_v11, 1  ;;  %v128_v22 = vrot.slane %v127_v12, 1  ;;  %v136_v23 = vrot.slane %v135_v13, 1 }
  0x51   :  { %v120_v24 = vrot.slane %v119_v14, 1  ;;  %v144_v25 = vrot.slane %v143_v15, 1  ;;  %v166_v26 = vrot.slane %v165_v16, 2  ;;  %v97_v30 = vadd.f32 %v96_v17, %v95_v7 }
  0x52   :  { %v105_v31 = vadd.f32 %v104_v18, %v103_v8  ;;  %v152_v32 = vrot.slane %v151_v19, 1  ;;  %v159_v33 = vadd.f32 %v158_v20, %v157_v10  ;;  %v113_v34 = vadd.f32 %v112_v21, %v111_v11 }
  0x53   :  { %v129_v35 = vadd.f32 %v128_v22, %v127_v12  ;;  %v137_v36 = vadd.f32 %v136_v23, %v135_v13  ;;  %v816_v37 = vstv %s782_s23  ;;  %v121_v38 = vadd.f32 %v120_v24, %v119_v14 }
  0x54   :  { %v145_v39 = vadd.f32 %v144_v25, %v143_v15  ;;  %v819_v40 = vstv %s784_s24  ;;  %v822_v41 = vstv %s786_s25  ;;  %v167_v42 = vadd.f32 %v166_v26, %v165_v16 }
  0x55   :  { %v827_v43 = vstv %s788_s26  ;;  %v830_v44 = vstv %s790_s27  ;;  %v833_v45 = vstv %s792_s28  ;;  %v835_v46 = vmul.f32 0.14285715, %v97_v30 }
  0x56   :  { %v837_v47 = vmul.f32 0.14285715, %v105_v31  ;;  %v153_v48 = vadd.f32 %v152_v32, %v151_v19  ;;  %v160_v49 = vrot.slane %v159_v33, 1  ;;  %v839_v50 = vmul.f32 0.14285715, %v113_v34 }
  0x57   :  { %v841_v51 = vmul.f32 0.14285715, %v129_v35  ;;  %v843_v52 = vmul.f32 0.14285715, %v137_v36  ;;  %v846_v53 = vstv %s794_s29  ;;  %v848_v54 = vmul.f32 0.14285715, %v121_v38 }
  0x58   :  { %v850_v55 = vmul.f32 0.14285715, %v145_v39  ;;  %v853_v56 = vstv %s796_s30  ;;  %v856_v57 = vstv %s798_s4  ;;  %v168_v58 = vrot.slane %v167_v42, 1 }
  0x59   :  { %v859_v59 = vstv %s800_s5  ;;  %v862_v60 = vstv %s802_s6  ;;  %v865_v61 = vstv %s804_s7  ;;  %v867_v62 = vmul.f32 0.14285715, %v153_v48 }
  0x5a   :  { %v161_v63 = vadd.f32 %v160_v49, %v159_v33  ;;  %v188_v0 = vmul.f32 %v807_v27, %v835_v46  ;;  %v190_v1 = vmul.f32 %v810_v28, %v837_v47  ;;  %v198_v2 = vmul.f32 %v807_v27, %v837_v47 }
  0x5b   :  { %v199_v3 = vmul.f32 %v810_v28, %v841_v51  ;;  %v205_v4 = vmul.f32 %v807_v27, %v839_v50  ;;  %v206_v5 = vmul.f32 %v810_v28, %v843_v52  ;;  %v212_v6 = vmul.f32 %v807_v27, %v848_v54 }
  0x5c   :  { %v213_v7 = vmul.f32 %v810_v28, %v850_v55  ;;  %v220_v8 = vmul.f32 %v819_v40, %v835_v46  ;;  %v222_v9 = vmul.f32 %v822_v41, %v837_v47  ;;  %v169_v10 = vadd.f32 %v168_v58, %v167_v42 }
  0x5d   :  { %v230_v11 = vmul.f32 %v819_v40, %v837_v47  ;;  %v231_v12 = vmul.f32 %v822_v41, %v841_v51  ;;  %v894_v13 = vstv %s824_s8  ;;  %v896_v14 = vmul.f32 0.14285715, %v161_v63 }
  0x5e   :  { %v193_v15 = vmul.f32 %v813_v29, %v839_v50  ;;  %v237_v16 = vmul.f32 %v819_v40, %v839_v50  ;;  %v238_v17 = vmul.f32 %v822_v41, %v843_v52  ;;  %v191_v18 = vadd.f32 %v190_v1, %v188_v0 }
  0x5f   :  { %v200_v19 = vadd.f32 %v199_v3, %v198_v2  ;;  %v201_v20 = vmul.f32 %v813_v29, %v843_v52  ;;  %v208_v21 = vmul.f32 %v813_v29, %v867_v62  ;;  %v207_v22 = vadd.f32 %v206_v5, %v205_v4 }
  0x60   :  { %v214_v23 = vadd.f32 %v213_v7, %v212_v6  ;;  %v223_v24 = vadd.f32 %v222_v9, %v220_v8  ;;  %v225_v25 = vmul.f32 %v827_v43, %v839_v50  ;;  %v910_v26 = vmul.f32 0.14285715, %v169_v10 }
  0x61   :  { %v232_v30 = vadd.f32 %v231_v12, %v230_v11  ;;  %v233_v31 = vmul.f32 %v827_v43, %v843_v52  ;;  %v240_v32 = vmul.f32 %v827_v43, %v867_v62  ;;  %v215_v33 = vmul.f32 %v813_v29, %v896_v14 }
  0x62   :  { %v239_v34 = vadd.f32 %v238_v17, %v237_v16  ;;  %v244_v35 = vmul.f32 %v819_v40, %v848_v54  ;;  %v245_v36 = vmul.f32 %v822_v41, %v850_v55  ;;  %v194_v38 = vadd.f32 %v193_v15, %v191_v18 }
  0x63   :  { %v196_v39 = vmul.f32 %v816_v37, %v848_v54  ;;  %v202_v42 = vadd.f32 %v201_v20, %v200_v19  ;;  %v203_v48 = vmul.f32 %v816_v37, %v850_v55  ;;  %v209_v49 = vadd.f32 %v208_v21, %v207_v22 }
  0x64   :  { %v210_v58 = vmul.f32 %v816_v37, %v896_v14  ;;  %v226_v63 = vadd.f32 %v225_v25, %v223_v24  ;;  %v228_v0 = vmul.f32 %v830_v44, %v848_v54  ;;  %v217_v1 = vmul.f32 %v816_v37, %v910_v26 }
  0x65   :  { %v234_v2 = vadd.f32 %v233_v31, %v232_v30  ;;  %v235_v3 = vmul.f32 %v830_v44, %v850_v55  ;;  %v242_v4 = vmul.f32 %v830_v44, %v896_v14  ;;  %v216_v5 = vadd.f32 %v215_v33, %v214_v23 }
  0x66   :  { %v241_v6 = vadd.f32 %v240_v32, %v239_v34  ;;  %v246_v7 = vadd.f32 %v245_v36, %v244_v35  ;;  %v247_v8 = vmul.f32 %v827_v43, %v896_v14  ;;  %v938_v9 = vadd.f32 %v196_v39, %v194_v38 }
  0x67   :  { %v940_v10 = vadd.f32 %v203_v48, %v202_v42  ;;  %v252_v11 = vmul.f32 %v833_v45, %v835_v46  ;;  %v254_v12 = vmul.f32 %v846_v53, %v837_v47  ;;  %v946_v15 = vadd.f32 %v210_v58, %v209_v49 }
  0x68   :  { %v948_v16 = vadd.f32 %v228_v0, %v226_v63  ;;  %v262_v17 = vmul.f32 %v833_v45, %v837_v47  ;;  %v263_v18 = vmul.f32 %v846_v53, %v841_v51  ;;  %v954_v19 = vadd.f32 %v235_v3, %v234_v2 }
  0x69   :  { %v249_v20 = vmul.f32 %v830_v44, %v910_v26  ;;  %v269_v21 = vmul.f32 %v833_v45, %v839_v50  ;;  %v270_v22 = vmul.f32 %v846_v53, %v843_v52  ;;  %v962_v23 = vadd.f32 %v217_v1, %v216_v5 }
  0x6a   :  { %v964_v24 = vadd.f32 %v242_v4, %v241_v6  ;;  %v248_v25 = vadd.f32 %v247_v8, %v246_v7  ;;  %v257_v30 = vmul.f32 %v853_v56, %v839_v50  ;;  %v255_v31 = vadd.f32 %v254_v12, %v252_v11 }
  0x6b   :  { %v260_v32 = vmul.f32 %v856_v57, %v848_v54  ;;  %v284_v33 = vmul.f32 %v859_v59, %v835_v46  ;;  %v286_v34 = vmul.f32 %v862_v60, %v837_v47  ;;  %v264_v35 = vadd.f32 %v263_v18, %v262_v17 }
  0x6c   :  { %v265_v36 = vmul.f32 %v853_v56, %v843_v52  ;;  %v272_v38 = vmul.f32 %v853_v56, %v867_v62  ;;  %v276_v39 = vmul.f32 %v833_v45, %v848_v54  ;;  %v271_v42 = vadd.f32 %v270_v22, %v269_v21 }
  0x6d   :  { %v277_v48 = vmul.f32 %v846_v53, %v850_v55  ;;  %v315_v46 = vmul.f32 %v938_v9, %v807_v27  ;;  %v316_v49 = vmul.f32 %v819_v40, %v940_v10  ;;  %v294_v58 = vmul.f32 %v859_v59, %v837_v47 }
  0x6e   :  { %v295_v63 = vmul.f32 %v862_v60, %v841_v51  ;;  %v301_v0 = vmul.f32 %v859_v59, %v839_v50  ;;  %v302_v1 = vmul.f32 %v862_v60, %v843_v52  ;;  %v994_v2 = vadd.f32 %v249_v20, %v248_v25 }
  0x6f   :  { %v267_v3 = vmul.f32 %v856_v57, %v850_v55  ;;  %v287_v4 = vadd.f32 %v286_v34, %v284_v33  ;;  %v289_v5 = vmul.f32 %v865_v61, %v839_v50  ;;  %v258_v6 = vadd.f32 %v257_v30, %v255_v31 }
  0x70   :  { %v266_v47 = vadd.f32 %v265_v36, %v264_v35  ;;  %v274_v51 = vmul.f32 %v856_v57, %v896_v14  ;;  %v279_v7 = vmul.f32 %v853_v56, %v896_v14  ;;  %v273_v8 = vadd.f32 %v272_v38, %v271_v42 }
  0x71   :  { %v278_v11 = vadd.f32 %v277_v48, %v276_v39  ;;  %v317_v12 = vadd.f32 %v316_v49, %v315_v46  ;;  %v318_v17 = vmul.f32 %v833_v45, %v946_v15  ;;  %v296_v18 = vadd.f32 %v295_v63, %v294_v58 }
  0x72   :  { %v297_v20 = vmul.f32 %v865_v61, %v843_v52  ;;  %v303_v21 = vadd.f32 %v302_v1, %v301_v0  ;;  %v304_v50 = vmul.f32 %v865_v61, %v867_v62  ;;  %v290_v22 = vadd.f32 %v289_v5, %v287_v4 }
  0x73   :  { %v292_v25 = vmul.f32 %v894_v13, %v848_v54  ;;  %v308_v30 = vmul.f32 %v859_v59, %v848_v54  ;;  %v309_v31 = vmul.f32 %v862_v60, %v850_v55  ;;  %v1016_v33 = vadd.f32 %v260_v32, %v258_v6 }
  0x74   :  { %v281_v34 = vmul.f32 %v856_v57, %v910_v26  ;;  %v322_v52 = vmul.f32 %v938_v9, %v810_v28  ;;  %v323_v62 = vmul.f32 %v822_v41, %v940_v10  ;;  %v1024_v35 = vadd.f32 %v267_v3, %v266_v47 }
  0x75   :  { %v1026_v36 = vadd.f32 %v274_v51, %v273_v8  ;;  %v319_v38 = vadd.f32 %v318_v17, %v317_v12  ;;  %v320_v54 = vmul.f32 %v859_v59, %v962_v23  ;;  %v298_v39 = vadd.f32 %v297_v20, %v296_v18 }
  0x76   :  { %v299_v32 = vmul.f32 %v894_v13, %v850_v55  ;;  %v305_v42 = vadd.f32 %v304_v50, %v303_v21  ;;  %v306_v48 = vmul.f32 %v894_v13, %v896_v14  ;;  %v280_v46 = vadd.f32 %v279_v7, %v278_v11  ;;  %v1058_v11 = vld [vmem:[#allocation7] sm:$0xf] }
  0x77   :  { %v1034_v49 = vadd.f32 %v292_v25, %v290_v22  ;;  %v310_v58 = vadd.f32 %v309_v31, %v308_v30  ;;  %v311_v63 = vmul.f32 %v865_v61, %v896_v14  ;;  %v324_v0 = vadd.f32 %v323_v62, %v322_v52 }
  0x78   :  { %v325_v1 = vmul.f32 %v846_v53, %v946_v15  ;;  %v343_v3 = vmul.f32 %v948_v16, %v807_v27  ;;  %v344_v55 = vmul.f32 %v954_v19, %v819_v40  ;;  %v313_v4 = vmul.f32 %v894_v13, %v910_v26 }
  0x79   :  { %v321_v5 = vadd.f32 %v320_v54, %v319_v38  ;;  %v329_v6 = vmul.f32 %v938_v9, %v813_v29  ;;  %v330_v14 = vmul.f32 %v827_v43, %v940_v10  ;;  %v1050_v47 = vadd.f32 %v299_v32, %v298_v39 }
  0x7a   :  { %v1052_v51 = vadd.f32 %v306_v48, %v305_v42  ;;  %v336_v7 = vmul.f32 %v938_v9, %v816_v37  ;;  %v337_v8 = vmul.f32 %v830_v44, %v940_v10  ;;  %v312_v26 = vadd.f32 %v311_v63, %v310_v58 }
  0x7b   :  { %v327_v12 = vmul.f32 %v862_v60, %v962_v23  ;;  %v371_v17 = vmul.f32 %v1016_v33, %v807_v27  ;;  %v372_v18 = vmul.f32 %v1024_v35, %v819_v40  ;;  %v326_v20 = vadd.f32 %v325_v1, %v324_v0 }
  0x7c   :  { %v332_v21 = vmul.f32 %v853_v56, %v946_v15  ;;  %v345_v9 = vadd.f32 %v344_v55, %v343_v3  ;;  %v346_v10 = vmul.f32 %v833_v45, %v964_v24  ;;  %v331_v50 = vadd.f32 %v330_v14, %v329_v6 }
  0x7d   :  { %v350_v22 = vmul.f32 %v948_v16, %v810_v28  ;;  %v351_v25 = vmul.f32 %v954_v19, %v822_v41  ;;  %v1075_v30 = vadd.f32 %v1058_v11, %v321_v5  ;;  %v338_v31 = vadd.f32 %v337_v8, %v336_v7 }
  0x7e   :  { %v339_v52 = vmul.f32 %v856_v57, %v946_v15  ;;  %v399_v62 = vmul.f32 %v1034_v49, %v807_v27  ;;  %v400_v38 = vmul.f32 %v1050_v47, %v819_v40  ;;  %v1083_v54 = vadd.f32 %v281_v34, %v280_v46 }
  0x7f   :  { %v1085_v39 = vadd.f32 %v313_v4, %v312_v26  ;;  %v373_v32 = vadd.f32 %v372_v18, %v371_v17  ;;  %v374_v42 = vmul.f32 %v1026_v36, %v833_v45  ;;  %v334_v48 = vmul.f32 %v865_v61, %v962_v23  ;;  %v1108_v26 = vld [vmem:[#allocation7 + $0x4] sm:$0xf] }
  0x80   :  { %v341_v15 = vmul.f32 %v894_v13, %v962_v23  ;;  %v347_v58 = vadd.f32 %v346_v10, %v345_v9  ;;  %v348_v27 = vmul.f32 %v859_v59, %v994_v2  ;;  %v333_v63 = vadd.f32 %v332_v21, %v331_v50 }
  0x81   :  { %v352_v40 = vadd.f32 %v351_v25, %v350_v22  ;;  %v353_v34 = vmul.f32 %v846_v53, %v964_v24  ;;  %614 = vrcp.f32 %v1075_v30  ;;  %v328_v46 = vadd.f32 %v327_v12, %v326_v20 }
  0x82   :  { %v340_v0 = vadd.f32 %v339_v52, %v338_v31  ;;  %v401_v1 = vadd.f32 %v400_v38, %v399_v62  ;;  %v402_v3 = vmul.f32 %v1052_v51, %v833_v45  ;;  %v375_v55 = vadd.f32 %v374_v42, %v373_v32 }
  0x83   :  { %v376_v23 = vmul.f32 %v859_v59, %v1083_v54  ;;  %v349_v4 = vadd.f32 %v348_v27, %v347_v58  ;;  %v357_v5 = vmul.f32 %v948_v16, %v813_v29  ;;  %v358_v6 = vmul.f32 %v954_v19, %v827_v43 }
  0x84   :  { %v335_v14 = vadd.f32 %v334_v48, %v333_v63  ;;  %v354_v7 = vadd.f32 %v353_v34, %v352_v40  ;;  %v355_v8 = vmul.f32 %v862_v60, %v994_v2  ;;  %v342_v12 = vadd.f32 %v341_v15, %v340_v0  ;;  %v1137_v63 = vld [vmem:[#allocation7 + $0xc] sm:$0xf] }
  0x85   :  { %v403_v45 = vadd.f32 %v402_v3, %v401_v1  ;;  %v404_v17 = vmul.f32 %v1085_v39, %v859_v59  ;;  %v432_v18 = vadd.f32 %v1058_v11, %v328_v46  ;;  %v360_v20 = vmul.f32 %v853_v56, %v964_v24  ;;  %v1123_v59 = vld [vmem:[#allocation7 + $0x8] sm:$0xf] }
  0x86   :  { %v377_v21 = vadd.f32 %v376_v23, %v375_v55  ;;  %v378_v9 = vmul.f32 %v1016_v33, %v810_v28  ;;  %v379_v10 = vmul.f32 %v1024_v35, %v822_v41  ;;  %v359_v50 = vadd.f32 %v358_v6, %v357_v5 }
  0x87   :  { %v364_v22 = vmul.f32 %v948_v16, %v816_v37  ;;  %v365_v25 = vmul.f32 %v954_v19, %v830_v44  ;;  %v435_v31 = vadd.f32 %v1108_v26, %v349_v4  ;;  %v356_v52 = vadd.f32 %v355_v8, %v354_v7 }
  0x88   :  { %v362_v62 = vmul.f32 %v865_v61, %v994_v2  ;;  %v433_v38 = vadd.f32 %v1058_v11, %v335_v14  ;;  %v405_v32 = vadd.f32 %v404_v17, %v403_v45  ;;  %v406_v42 = vmul.f32 %v1034_v49, %v810_v28 }
  0x89   :  { %v407_v16 = vmul.f32 %v1050_v47, %v822_v41  ;;  %v455_v48 = vrot.slane %v432_v18, 1  ;;  %v367_v19 = vmul.f32 %v856_v57, %v964_v24  ;;  %v380_v58 = vadd.f32 %v379_v10, %v378_v9 }
  0x8a   :  { %v381_v27 = vmul.f32 %v1026_v36, %v846_v53  ;;  %v439_v40 = vadd.f32 %v1123_v59, %v377_v21  ;;  %v361_v34 = vadd.f32 %v360_v20, %v359_v50  ;;  %v366_v46 = vadd.f32 %v365_v25, %v364_v22 }
  0x8b   :  { %v615_v15 = vpop.eup %614  ;;  %v434_v28 = vadd.f32 %v1058_v11, %v342_v12  ;;  %v385_v41 = vmul.f32 %v1016_v33, %v813_v29  ;;  %v386_v1 = vmul.f32 %v1024_v35, %v827_v43  ;;  %v409_v24 = vmul.f32 %v1052_v51, %v846_v53 }
  0x8c   :  { %v453_v0 = vmul.f32 %v615_v15, %v435_v31  ;;  %v1147_v3 = vrot.slane %v433_v38, 2  ;;  %v408_v55 = vadd.f32 %v407_v16, %v406_v42  ;;  %v436_v23 = vadd.f32 %v1108_v26, %v356_v52 }
  0x8d   :  { %v443_v4 = vadd.f32 %v1137_v63, %v405_v32  ;;  %v382_v6 = vadd.f32 %v381_v27, %v380_v58  ;;  %v383_v11 = vmul.f32 %v862_v60, %v1083_v54  ;;  %v478_v14 = vmul.f32 %v615_v15, %v439_v40 }
  0x8e   :  { %v457_v5 = vmul.f32 %v455_v48, %v453_v0  ;;  %v368_v7 = vadd.f32 %v367_v19, %v366_v46  ;;  %v369_v8 = vmul.f32 %v894_v13, %v994_v2  ;;  %v1155_v45 = vrot.slane %v434_v28, 3 }
  0x8f   :  { %v363_v53 = vadd.f32 %v362_v62, %v361_v34  ;;  %v387_v17 = vadd.f32 %v386_v1, %v385_v41  ;;  %v388_v18 = vmul.f32 %v1026_v36, %v853_v56  ;;  %v465_v20 = vmul.f32 %v1147_v3, %v453_v0 }
  0x90   :  { %v459_v12 = vrot.slane %v457_v5, 7  ;;  %v410_v21 = vadd.f32 %v409_v24, %v408_v55  ;;  %v411_v9 = vmul.f32 %v1085_v39, %v862_v60  ;;  %v1164_v50 = vmul.f32 %v615_v15, %v443_v4 }
  0x91   :  { %v384_v22 = vadd.f32 %v383_v11, %v382_v6  ;;  %v392_v2 = vmul.f32 %v1016_v33, %v816_v37  ;;  %v393_v25 = vmul.f32 %v1024_v35, %v830_v44  ;;  %v479_v31 = vmul.f32 %v478_v14, %v455_v48 }
  0x92   :  { %v1162_v10 = vsub.f32 %v436_v23, %v459_v12  ;;  %v370_v52 = vadd.f32 %v369_v8, %v368_v7  ;;  %v473_v62 = vmul.f32 %v1155_v45, %v453_v0  ;;  %v389_v38 = vadd.f32 %v388_v18, %v387_v17 }
  0x93   :  { %v390_v60 = vmul.f32 %v865_v61, %v1083_v54  ;;  %v437_v32 = vadd.f32 %v1108_v26, %v363_v53  ;;  %v467_v42 = vrot.slane %v465_v20, 6  ;;  %v412_v16 = vadd.f32 %v411_v9, %v410_v21 }
  0x94   :  { %616 = vrcp.f32 %v1162_v10  ;;  %v413_v33 = vmul.f32 %v1034_v49, %v813_v29  ;;  %v414_v35 = vmul.f32 %v1050_v47, %v827_v43  ;;  %v495_v15 = vmul.f32 %v1164_v50, %v455_v48 }
  0x95   :  { %v394_v19 = vadd.f32 %v393_v25, %v392_v2  ;;  %v395_v58 = vmul.f32 %v1026_v36, %v856_v57  ;;  %v440_v27 = vadd.f32 %v1123_v59, %v384_v22  ;;  %v481_v40 = vrot.slane %v479_v31, 7 }
  0x96   :  { %v438_v34 = vadd.f32 %v1108_v26, %v370_v52  ;;  %v475_v46 = vrot.slane %v473_v62, 5  ;;  %v391_v28 = vadd.f32 %v390_v60, %v389_v38  ;;  %v469_v0 = vsub.f32 %v437_v32, %v467_v42 }
  0x97   :  { %v484_v41 = vmul.f32 %v478_v14, %v1147_v3  ;;  %v415_v29 = vadd.f32 %v414_v35, %v413_v33  ;;  %v416_v43 = vmul.f32 %v1052_v51, %v853_v56  ;;  %v444_v48 = vadd.f32 %v1137_v63, %v412_v16 }
  0x98   :  { %v497_v1 = vrot.slane %v495_v15, 7  ;;  %v396_v24 = vadd.f32 %v395_v58, %v394_v19  ;;  %v397_v36 = vmul.f32 %v894_v13, %v1083_v54  ;;  %v483_v55 = vsub.f32 %v440_v27, %v481_v40 }
  0x99   :  { %v420_v26 = vmul.f32 %v1034_v49, %v816_v37  ;;  %v421_v23 = vmul.f32 %v1050_v47, %v830_v44  ;;  %v477_v4 = vsub.f32 %v438_v34, %v475_v46  ;;  %v441_v5 = vadd.f32 %v1123_v59, %v391_v28 }
  0x9a   :  { %v486_v6 = vrot.slane %v484_v41, 6  ;;  %v521_v11 = vrot.slane %v469_v0, 1  ;;  %v417_v7 = vadd.f32 %v416_v43, %v415_v29  ;;  %v418_v8 = vmul.f32 %v1085_v39, %v865_v61 }
  0x9b   :  { %v499_v12 = vsub.f32 %v444_v48, %v497_v1  ;;  %v398_v53 = vadd.f32 %v397_v36, %v396_v24  ;;  %v422_v17 = vadd.f32 %v421_v23, %v420_v26  ;;  %v423_v37 = vmul.f32 %v1052_v51, %v856_v57 }
  0x9c   :  { %v489_v49 = vmul.f32 %v478_v14, %v1155_v45  ;;  %v529_v44 = vrot.slane %v477_v4, 2  ;;  %v488_v47 = vsub.f32 %v441_v5, %v486_v6  ;;  %v419_v20 = vadd.f32 %v418_v8, %v417_v7 }
  0x9d   :  { %v500_v21 = vmul.f32 %v1164_v50, %v1147_v3  ;;  %v425_v61 = vmul.f32 %v1085_v39, %v894_v13  ;;  %v424_v2 = vadd.f32 %v423_v37, %v422_v17  ;;  %v442_v25 = vadd.f32 %v1123_v59, %v398_v53 }
  0x9e   :  { %v617_v56 = vpop.eup %616  ;;  %v491_v31 = vrot.slane %v489_v49, 5  ;;  %v445_v51 = vadd.f32 %v1137_v63, %v419_v20  ;;  %v505_v3 = vmul.f32 %v1164_v50, %v1155_v45  ;;  %v510_v13 = vand.u32 2147483647, %v1162_v10 }
  0x9f   :  { %v519_v54 = vmul.f32 %v617_v56, %v483_v55  ;;  %v536_v9 = vmul.f32 %v617_v56, %v499_v12  ;;  %v502_v14 = vrot.slane %v500_v21, 6  ;;  %v426_v38 = vadd.f32 %v425_v61, %v424_v2 }
  0xa0   :  { %v493_v60 = vsub.f32 %v442_v25, %v491_v31  ;;  %v507_v16 = vrot.slane %v505_v3, 5  ;;  %v447_v15 = vand.u32 2147483647, %v1075_v30 }
  0xa1   :  { %v523_v18 = vmul.f32 %v521_v11, %v519_v54  ;;  %v531_v52 = vmul.f32 %v529_v44, %v519_v54  ;;  %v537_v62 = vmul.f32 %v536_v9, %v521_v11  ;;  %v504_v42 = vsub.f32 %v445_v51, %v502_v14 }
  0xa2   :  { %v446_v59 = vadd.f32 %v1137_v63, %v426_v38  ;;  %v542_v35 = vmul.f32 %v536_v9, %v529_v44 }
  0xa3   :  { %v525_v22 = vrot.slane %v523_v18, 7  ;;  %v533_v32 = vrot.slane %v531_v52, 6  ;;  %v539_v39 = vrot.slane %v537_v62, 7 }
  0xa4   :  { %v509_v27 = vsub.f32 %v446_v59, %v507_v16  ;;  %v544_v40 = vrot.slane %v542_v35, 6 }
  0xa5   :  { %v527_v57 = vsub.f32 %v488_v47, %v525_v22  ;;  %v535_v33 = vsub.f32 %v493_v60, %v533_v32  ;;  %v541_v19 = vsub.f32 %v504_v42, %v539_v39 }
  0xa6   :  { %v546_v50 = vsub.f32 %v509_v27, %v544_v40 }
  0xa7   :  { %618 = vrcp.f32 %v527_v57  ;;  %v547_v58 = vand.u32 2147483647, %v527_v57  ;;  %v558_v34 = vrot.slane %v535_v33, 1 }
  0xa8   :  { %620 = vlog2.f32 %v510_v13 }
  0xa9   :  { %622 = vlog2.f32 %v447_v15 }
  0xaa   :  { %624 = vlog2.f32 %v547_v58 }
  0xb1   :  { %v619_v46 = vpop.eup %618 }
  0xb2   :  { %v556_v45 = vmul.f32 %v619_v46, %v541_v19  ;;  %v621_v0 = vpop.eup %620 }
  0xb3   :  { %v623_v29 = vpop.eup %622  ;;  %v512_v43 = vmul.f32 0.6931472, %v621_v0 }
  0xb4   :  { %v560_v10 = vmul.f32 %v558_v34, %v556_v45  ;;  %v625_v48 = vpop.eup %624  ;;  %v449_v30 = vmul.f32 0.6931472, %v623_v29 }
  0xb5   :  { %v514_v1 = vrot.slane %v512_v43, 1  ;;  %v549_v24 = vmul.f32 0.6931472, %v625_v48 }
  0xb6   :  { %v562_v28 = vrot.slane %v560_v10, 7 }
  0xb7   :  { %v516_v36 = vadd.f32 %v514_v1, %v449_v30  ;;  %v551_v55 = vrot.slane %v549_v24, 2 }
  0xb8   :  { %v564_v63 = vsub.f32 %v546_v50, %v562_v28 }
  0xb9   :  { %v553_v23 = vadd.f32 %v551_v55, %v516_v36 }
  0xba   :  { %v565_v41 = vand.u32 2147483647, %v564_v63 }
  0xbc   :  { %626 = vlog2.f32 %v565_v41 }
  0xc6   :  { %v627_v26 = vpop.eup %626 }
  0xc7   :  { %v567_v4 = vmul.f32 0.6931472, %v627_v26 }
  0xc9   :  { %v569_v5 = vrot.slane %v567_v4, 3 }
  0xcb   :  { %v571_v6 = vadd.f32 %v569_v5, %v553_v23 }
  0xcd   :  { %v572_v11 = vmul.f32 0.5, %v571_v6 }
  0xcf   :  { %573 = vst [vmem:[#allocation9] sm:$0x1] %v572_v11 }
  0xd0   :  { %693 = shalt.err (!%p690_p9)
}
  0xd1   :  { %s694_s14 = scalar_lea.hbm %s1226_s3, 16 }
  0xd2   :  { %p695_p10 = scmp.ne.s32.totalorder %s1226_s3, %s694_s14  ;;  %p698_p11 = scmp.lt.u32.totalorder %s694_s14, %s1226_s3 }
  0xd4   :  { %p700_p12 = pnand %p698_p11, %p695_p10 }
  0xd6   :  { %703 = shalt.err (!%p700_p12)
}
  0xd7   :  { %583 = dma.vmem_to_hbm [thread:$0]  %s581_s9, 16, %s1226_s3, [#allocation4]  }
  0xd8   :  { %710 = dma.done.wait [#allocation4], 16  }
  0xd9   :  { %711 = vsyncadd [#allocation4], 4294967280 }
  0xda   :  { %587 = vsyncpa [#allocation3], 1 }
  0xdb   :  { %588 = vsyncpa [#allocation8], 1 }
  0xdc   :  { %589 = vsyncpa [#allocation4], 1 }
  0xdd   :  { %590 = vsyncpa [#allocation5], 1 }

</bundles_post_ra>
